<compile_context>
chip_gen: v7x
topology: tpu7x:2x2x1
jax: 0.10.0
libtpu: 0.0.40
codegen_flags: <defaults>
</compile_context>

<pallas_src>
import functools

import jax
import jax.numpy as jnp
import numpy as np
from jax.experimental import pallas as pl
from jax.experimental.pallas import tpu as pltpu


# ----------------------------------------------------------------------------
# Kernel
# ----------------------------------------------------------------------------
def _window_attention_kernel(
    x_ref, wqkv_ref, bqkv_ref, bias_ref, wp_ref, bp_ref, o_ref, acc_ref,
    *, num_head, head_dim, c):
    """One grid step == WB windows.

    x_ref    : (WB, N, C)        window tokens
    wqkv_ref : (C, 3C)           fused QKV weight (x @ W layout, W_q pre-scaled)
    bqkv_ref : (1, 3C)           fused QKV bias (b_q pre-scaled)
    bias_ref : (num_head, N, N)  relative position bias (native dtype)
    wp_ref   : (C, C)            output projection weight
    bp_ref   : (1, C)            output projection bias
    o_ref    : (WB, N, C)
    acc_ref  : (WB, N, C) f32 VMEM scratch for the concatenated head outputs
    """
    f32 = jnp.float32
    x = x_ref[...]                                   # (WB, N, C)
    mxu_dtype = x.dtype                              # MXU operand dtype

    # Fused QKV projection, f32 accumulation on the MXU.  (WB, N, 3C)
    qkv = jax.lax.dot_general(x, wqkv_ref[...],
                              (((2,), (0,)), ((), ())),
                              preferred_element_type=f32)
    qkv = qkv + bqkv_ref[...].astype(f32)

    q = qkv[:, :, :c]                                # scale already folded in
    k = qkv[:, :, c:2 * c]
    v = qkv[:, :, 2 * c:]

    # Per-head attention, batched over the WB windows via dot_general batch
    # dims (num_head is small and compile-time -> static Python loop).
    for h in range(num_head):
        lo = h * head_dim
        hi = lo + head_dim
        qh = q[:, :, lo:hi].astype(mxu_dtype)        # (WB, N, hd)
        kh = k[:, :, lo:hi].astype(mxu_dtype)        # (WB, N, hd)
        vh = v[:, :, lo:hi].astype(mxu_dtype)        # (WB, N, hd)

        # logits = q @ k^T (+ relative position bias); scale folded into W_q.
        s = jax.lax.dot_general(qh, kh, (((2,), (2,)), ((0,), (0,))),
                                preferred_element_type=f32)          # (WB, N, N)
        s = s + bias_ref[h][None].astype(f32)

        # numerically-stable softmax in f32, EUP approximate reciprocal
        s = s - jnp.max(s, axis=-1, keepdims=True)
        e = jnp.exp(s)
        p = e * pl.reciprocal(jnp.sum(e, axis=-1, keepdims=True), approx=True)

        oh = jax.lax.dot_general(p.astype(mxu_dtype), vh,
                                 (((2,), (1,)), ((0,), (0,))),
                                 preferred_element_type=f32)         # (WB, N, hd)
        acc_ref[:, :, lo:hi] = oh                    # static lane-offset write

    # Output projection on the concatenated heads (single (C, C) matmul).
    out = jax.lax.dot_general(acc_ref[...].astype(mxu_dtype), wp_ref[...],
                              (((2,), (0,)), ((), ())),
                              preferred_element_type=f32)
    o_ref[...] = (out + bp_ref[...].astype(f32)).astype(o_ref.dtype)


# ----------------------------------------------------------------------------
# pallas_call wrapper
# ----------------------------------------------------------------------------
def _pick_window_block(BN, N, C):
    """Number of windows per grid step: ~512 token rows, VMEM-bounded."""
    if BN <= 0:
        return 1
    wb = max(1, 512 // max(N, 1))
    # keep one f32 activation block <= ~2 MiB so intermediates + double
    # buffering stay well inside scoped VMEM on v5e/v6e/v7x
    max_block_elems = (2 * 1024 * 1024) // 4
    while wb > 1 and wb * N * C > max_block_elems:
        wb //= 2
    return min(wb, BN)


def window_attention(x, w_qkv, b_qkv, rel_pos_bias, w_proj, b_proj,
                     *, num_head, scale):
    """x: (BN, N, C).  w_qkv: (C, 3C), b_qkv: (3C,), rel_pos_bias: (nH, N, N)."""
    BN, N, C = x.shape
    assert C % num_head == 0, "dim must be divisible by num_head"
    head_dim = C // num_head

    # Fold `scale` into the Q projection (one-time wrapper-side rescale), keep
    # the QKV params as ONE fused slab, biases as lane-dense (1, 3C)/(1, C).
    w_qkv_s = jnp.concatenate([w_qkv[:, :C] * scale, w_qkv[:, C:]], axis=1)
    b_qkv_s = jnp.concatenate([b_qkv[:C] * scale, b_qkv[C:]], axis=0)
    b_qkv_s = b_qkv_s.reshape(1, 3 * C)
    b_p = b_proj.reshape(1, C)
    # rel_pos_bias stays in its native dtype (kernel casts per use).

    # Batch WB windows per grid step; pad BN so the grid tiles exactly.
    wb = _pick_window_block(BN, N, C)
    n_blocks = pl.cdiv(BN, wb)
    BN_pad = n_blocks * wb
    x_in = jnp.pad(x, ((0, BN_pad - BN), (0, 0), (0, 0))) if BN_pad != BN else x

    # TODO(synk): for Swin stages where C is not a multiple of 128 (e.g. C=96)
    # padding the channel dim to 128 would make head slices / stores fully
    # lane-dense; skipped here (correctness is unaffected).

    kernel = functools.partial(_window_attention_kernel,
                               num_head=num_head, head_dim=head_dim, c=C)

    out = pl.pallas_call(
        kernel,
        out_shape=jax.ShapeDtypeStruct((BN_pad, N, C), x.dtype),
        grid=(n_blocks,),
        in_specs=[
            pl.BlockSpec((wb, N, C), lambda b: (b, 0, 0)),            # x
            pl.BlockSpec((C, 3 * C), lambda b: (0, 0)),               # w_qkv
            pl.BlockSpec((1, 3 * C), lambda b: (0, 0)),               # b_qkv
            pl.BlockSpec((num_head, N, N), lambda b: (0, 0, 0)),      # rel pos bias
            pl.BlockSpec((C, C), lambda b: (0, 0)),                   # w_proj
            pl.BlockSpec((1, C), lambda b: (0, 0)),                   # b_proj
        ],
        out_specs=pl.BlockSpec((wb, N, C), lambda b: (b, 0, 0)),
        scratch_shapes=[pltpu.VMEM((wb, N, C), jnp.float32)],
        compiler_params=pltpu.CompilerParams(
            dimension_semantics=("parallel",),
            vmem_limit_bytes=48 * 1024 * 1024,   # > v5e/v6e defaults, < v7x 64 MiB
        ),
    )(x_in, w_qkv_s, b_qkv_s, rel_pos_bias, w_proj, b_p)

    return out[:BN] if BN_pad != BN else out


# ----------------------------------------------------------------------------
# Module (parameter container + relative position index, mirrors PyTorch)
# ----------------------------------------------------------------------------
def _relative_position_index(window_size):
    Wh, Ww = window_size
    coords = np.stack(np.meshgrid(np.arange(Wh), np.arange(Ww), indexing="ij"))  # (2,Wh,Ww)
    coords_flat = coords.reshape(2, -1)                                          # (2, N)
    rel = coords_flat[:, :, None] - coords_flat[:, None, :]                      # (2, N, N)
    rel = rel.transpose(1, 2, 0).copy()                                          # (N, N, 2)
    rel[:, :, 0] += Wh - 1
    rel[:, :, 1] += Ww - 1
    rel[:, :, 0] *= 2 * Ww - 1
    return jnp.asarray(rel.sum(-1), dtype=jnp.int32)                             # (N, N)


class WindowAttention:
    """JAX/Pallas port of the PyTorch WindowAttention (forward pass only)."""

    def __init__(self, dim, window_size, num_head, qkv_bias=True,
                 atten_drop=0.0, proj_drop=0.0, *, key, dtype=jnp.float32):
        self.dim = dim
        self.window_size = tuple(window_size)
        self.num_head = num_head
        head_dim = dim // num_head
        self.scale = head_dim ** (-0.5)

        k_tab, k_qw, k_qb, k_pw, k_pb = jax.random.split(key, 5)
        num_rel = (2 * self.window_size[0] - 1) * (2 * self.window_size[1] - 1)

        # trunc_normal_(std=0.02)
        self.relative_position_table = (
            0.02 * jax.random.truncated_normal(
                k_tab, -2.0, 2.0, (num_rel, num_head), jnp.float32)).astype(dtype)
        self.relative_position_index = _relative_position_index(self.window_size)

        # Linear params in (in, out) layout: y = x @ W + b.
        lim = 1.0 / np.sqrt(dim)
        self.w_qkv = jax.random.uniform(k_qw, (dim, 3 * dim), dtype, -lim, lim)
        self.b_qkv = (jax.random.uniform(k_qb, (3 * dim,), dtype, -lim, lim)
                      if qkv_bias else jnp.zeros((3 * dim,), dtype))
        self.w_proj = jax.random.uniform(k_pw, (dim, dim), dtype, -lim, lim)
        self.b_proj = jax.random.uniform(k_pb, (dim,), dtype, -lim, lim)

        # TODO(synk): atten_drop / proj_drop are identity at p=0.0 (eval mode);
        # training-time dropout is not implemented inside the Pallas kernel.
        self.atten_drop = atten_drop
        self.proj_drop = proj_drop

    def _relative_position_bias(self, N):
        idx = self.relative_position_index.reshape(-1)
        bias = self.relative_position_table[idx]                       # (N*N, nH)
        bias = bias.reshape(N, N, self.num_head).transpose(2, 0, 1)    # (nH, N, N)
        return bias

    def __call__(self, x, mask=None):
        # TODO(synk): `mask` is accepted but unused — the reference forward
        # never applies it either (non-shifted-window semantics).
        _, N, _ = x.shape
        bias = self._relative_position_bias(N)
        return window_attention(x, self.w_qkv, self.b_qkv, bias,
                                self.w_proj, self.b_proj,
                                num_head=self.num_head, scale=self.scale)


# ----------------------------------------------------------------------------
# Pure-JAX reference (mirrors the PyTorch forward exactly)
# ----------------------------------------------------------------------------
def _reference_forward(module, x):
    BN, N, C = x.shape
    nH = module.num_head
    hd = C // nH
    qkv = x @ module.w_qkv + module.b_qkv                           # (BN, N, 3C)
    qkv = qkv.reshape(BN, N, 3, nH, hd).transpose(2, 0, 3, 1, 4)    # (3, BN, nH, N, hd)
    q, k, v = qkv[0], qkv[1], qkv[2]
    attn = (q @ jnp.swapaxes(k, -1, -2)) * module.scale             # (BN, nH, N, N)
    attn = attn + module._relative_position_bias(N)[None]
    attn = jax.nn.softmax(attn, axis=-1)
    out = (attn @ v).transpose(0, 2, 1, 3).reshape(BN, N, C)
    return out @ module.w_proj + module.b_proj


# ----------------------------------------------------------------------------
# Smoke test
# ----------------------------------------------------------------------------
if __name__ == "__main__":
    key = jax.random.PRNGKey(0)
    k_param, k_tab, k_x = jax.random.split(key, 3)

    dim, window_size, num_head = 32, (4, 4), 4          # N = 16, head_dim = 8
    BN = 6
    N = window_size[0] * window_size[1]

    module = WindowAttention(dim, window_size, num_head, qkv_bias=True, key=k_param)
    # Use a larger-magnitude bias table in the test so a missing-bias bug is
    # detectable above matmul rounding noise (forward semantics are unchanged).
    module.relative_position_table = 0.5 * jax.random.normal(
        k_tab, module.relative_position_table.shape, jnp.float32)

    x = jax.random.normal(k_x, (BN, N, dim), dtype=jnp.float32)

    out = jax.block_until_ready(module(x))

    with jax.default_matmul_precision("highest"):
        ref = jax.block_until_ready(_reference_forward(module, x))

    assert out.shape == ref.shape == (BN, N, dim)
    assert bool(jnp.all(jnp.isfinite(out)))
    max_err = float(jnp.max(jnp.abs(out - ref)))
    assert max_err < 2e-2, f"mismatch vs reference: max abs err {max_err}"

    print("KERNEL_OK")
</pallas_src>

<mosaic_0001>
module attributes {stable_mosaic.version = 11 : i64} {
  func.func @_window_attention_kernel(%arg0: i32, %arg1: memref<6x16x32xf32, #tpu.memory_space<vmem>>, %arg2: memref<32x96xf32, #tpu.memory_space<vmem>>, %arg3: memref<1x96xf32, #tpu.memory_space<vmem>>, %arg4: memref<4x16x16xf32, #tpu.memory_space<vmem>>, %arg5: memref<32x32xf32, #tpu.memory_space<vmem>>, %arg6: memref<1x32xf32, #tpu.memory_space<vmem>>, %arg7: memref<6x16x32xf32, #tpu.memory_space<vmem>>, %arg8: memref<6x16x32xf32, #tpu.memory_space<vmem>>) attributes {dimension_semantics = [#tpu.dimension_semantics<parallel>], iteration_bounds = array<i64: 1>, scalar_prefetch = 0 : i64, scratch_operands = 1 : i64, tpu.core_type = #tpu.core_type<tc>, window_params = [{transform_indices = @transform_0, window_bounds = array<i64: 6, 16, 32>}, {pipeline_mode = #tpu.pipeline_mode<synchronous>, transform_indices = @transform_1, window_bounds = array<i64: 32, 96>}, {pipeline_mode = #tpu.pipeline_mode<synchronous>, transform_indices = @transform_2, window_bounds = array<i64: 1, 96>}, {pipeline_mode = #tpu.pipeline_mode<synchronous>, transform_indices = @transform_3, window_bounds = array<i64: 4, 16, 16>}, {pipeline_mode = #tpu.pipeline_mode<synchronous>, transform_indices = @transform_4, window_bounds = array<i64: 32, 32>}, {pipeline_mode = #tpu.pipeline_mode<synchronous>, transform_indices = @transform_5, window_bounds = array<i64: 1, 32>}, {transform_indices = @transform_6, window_bounds = array<i64: 6, 16, 32>}]} {
    %c0 = arith.constant 0 : index
    %c0_0 = arith.constant 0 : index
    %c0_1 = arith.constant 0 : index
    %0 = vector.load %arg1[%c0, %c0_0, %c0_1] : memref<6x16x32xf32, #tpu.memory_space<vmem>>, vector<6x16x32xf32>
    %c0_2 = arith.constant 0 : index
    %c0_3 = arith.constant 0 : index
    %1 = vector.load %arg2[%c0_2, %c0_3] : memref<32x96xf32, #tpu.memory_space<vmem>>, vector<32x96xf32>
    %cst = arith.constant dense<0.000000e+00> : vector<6x16x96xf32>
    %2 = tpu.matmul %0, %1, %cst {dimension_numbers = #tpu.dot_dimension_numbers<[2], [0], [0, 1], [1], [0, 0, 0, 1, 1, 1], [], []>} : vector<6x16x32xf32>, vector<32x96xf32>, vector<6x16x96xf32> -> vector<6x16x96xf32>
    %c0_4 = arith.constant 0 : index
    %c0_5 = arith.constant 0 : index
    %3 = vector.load %arg3[%c0_4, %c0_5] : memref<1x96xf32, #tpu.memory_space<vmem>>, vector<1x96xf32>
    %4 = vector.shape_cast %3 : vector<1x96xf32> to vector<1x1x96xf32>
    %5 = vector.broadcast %4 : vector<1x1x96xf32> to vector<6x16x96xf32>
    %6 = arith.addf %2, %5 : vector<6x16x96xf32>
    %7 = vector.extract_strided_slice %6 {offsets = [0, 0, 0], sizes = [6, 16, 32], strides = [1, 1, 1]} : vector<6x16x96xf32> to vector<6x16x32xf32>
    %8 = vector.extract_strided_slice %6 {offsets = [0, 0, 32], sizes = [6, 16, 32], strides = [1, 1, 1]} : vector<6x16x96xf32> to vector<6x16x32xf32>
    %9 = vector.extract_strided_slice %6 {offsets = [0, 0, 64], sizes = [6, 16, 32], strides = [1, 1, 1]} : vector<6x16x96xf32> to vector<6x16x32xf32>
    %10 = vector.extract_strided_slice %7 {offsets = [0, 0, 0], sizes = [6, 16, 8], strides = [1, 1, 1]} : vector<6x16x32xf32> to vector<6x16x8xf32>
    %11 = vector.extract_strided_slice %8 {offsets = [0, 0, 0], sizes = [6, 16, 8], strides = [1, 1, 1]} : vector<6x16x32xf32> to vector<6x16x8xf32>
    %12 = vector.extract_strided_slice %9 {offsets = [0, 0, 0], sizes = [6, 16, 8], strides = [1, 1, 1]} : vector<6x16x32xf32> to vector<6x16x8xf32>
    %cst_6 = arith.constant dense<0.000000e+00> : vector<6x16x16xf32>
    %13 = tpu.matmul %10, %11, %cst_6 {dimension_numbers = #tpu.dot_dimension_numbers<[2], [2], [1], [1], [0, 0, 0, 1, 1, 1], [0], [0]>} : vector<6x16x8xf32>, vector<6x16x8xf32>, vector<6x16x16xf32> -> vector<6x16x16xf32>
    %c0_7 = arith.constant 0 : index
    %c0_8 = arith.constant 0 : index
    %c0_9 = arith.constant 0 : index
    %14 = vector.load %arg4[%c0_7, %c0_8, %c0_9] : memref<4x16x16xf32, #tpu.memory_space<vmem>>, vector<1x16x16xf32>
    %15 = vector.shape_cast %14 : vector<1x16x16xf32> to vector<16x16xf32>
    %16 = vector.shape_cast %15 : vector<16x16xf32> to vector<1x16x16xf32>
    %17 = vector.broadcast %16 : vector<1x16x16xf32> to vector<6x16x16xf32>
    %18 = arith.addf %13, %17 : vector<6x16x16xf32>
    %cst_10 = arith.constant dense<0xFF800000> : vector<6x16xf32>
    %19 = vector.multi_reduction <maximumf>, %18, %cst_10 [2] : vector<6x16x16xf32> to vector<6x16xf32>
    %20 = vector.shape_cast %19 : vector<6x16xf32> to vector<6x16x1xf32>
    %21 = vector.broadcast %20 : vector<6x16x1xf32> to vector<6x16x16xf32>
    %22 = arith.subf %18, %21 : vector<6x16x16xf32>
    %23 = math.exp %22 : vector<6x16x16xf32>
    %cst_11 = arith.constant dense<0.000000e+00> : vector<6x16xf32>
    %24 = vector.multi_reduction <add>, %23, %cst_11 [2] : vector<6x16x16xf32> to vector<6x16xf32>
    %25 = vector.shape_cast %24 : vector<6x16xf32> to vector<6x16x1xf32>
    %26 = tpu.reciprocal %25 {approx = true} : vector<6x16x1xf32> -> vector<6x16x1xf32>
    %27 = vector.broadcast %26 : vector<6x16x1xf32> to vector<6x16x16xf32>
    %28 = arith.mulf %23, %27 : vector<6x16x16xf32>
    %cst_12 = arith.constant dense<0.000000e+00> : vector<6x16x8xf32>
    %29 = tpu.matmul %28, %12, %cst_12 {dimension_numbers = #tpu.dot_dimension_numbers<[2], [1], [1], [2], [0, 0, 0, 1, 1, 2], [0], [0]>} : vector<6x16x16xf32>, vector<6x16x8xf32>, vector<6x16x8xf32> -> vector<6x16x8xf32>
    %c0_13 = arith.constant 0 : index
    %c0_14 = arith.constant 0 : index
    %c0_15 = arith.constant 0 : index
    %30 = vector.load %arg8[%c0_13, %c0_14, %c0_15] : memref<6x16x32xf32, #tpu.memory_space<vmem>>, vector<6x16x8xf32>
    tpu.vector_store %arg8[%c0_13, %c0_14, %c0_15], %29 {strides = array<i32>} : memref<6x16x32xf32, #tpu.memory_space<vmem>>, vector<6x16x8xf32>,
    %31 = vector.extract_strided_slice %7 {offsets = [0, 0, 8], sizes = [6, 16, 8], strides = [1, 1, 1]} : vector<6x16x32xf32> to vector<6x16x8xf32>
    %32 = vector.extract_strided_slice %8 {offsets = [0, 0, 8], sizes = [6, 16, 8], strides = [1, 1, 1]} : vector<6x16x32xf32> to vector<6x16x8xf32>
    %33 = vector.extract_strided_slice %9 {offsets = [0, 0, 8], sizes = [6, 16, 8], strides = [1, 1, 1]} : vector<6x16x32xf32> to vector<6x16x8xf32>
    %cst_16 = arith.constant dense<0.000000e+00> : vector<6x16x16xf32>
    %34 = tpu.matmul %31, %32, %cst_16 {dimension_numbers = #tpu.dot_dimension_numbers<[2], [2], [1], [1], [0, 0, 0, 1, 1, 1], [0], [0]>} : vector<6x16x8xf32>, vector<6x16x8xf32>, vector<6x16x16xf32> -> vector<6x16x16xf32>
    %c1 = arith.constant 1 : index
    %c0_17 = arith.constant 0 : index
    %c0_18 = arith.constant 0 : index
    %35 = vector.load %arg4[%c1, %c0_17, %c0_18] : memref<4x16x16xf32, #tpu.memory_space<vmem>>, vector<1x16x16xf32>
    %36 = vector.shape_cast %35 : vector<1x16x16xf32> to vector<16x16xf32>
    %37 = vector.shape_cast %36 : vector<16x16xf32> to vector<1x16x16xf32>
    %38 = vector.broadcast %37 : vector<1x16x16xf32> to vector<6x16x16xf32>
    %39 = arith.addf %34, %38 : vector<6x16x16xf32>
    %cst_19 = arith.constant dense<0xFF800000> : vector<6x16xf32>
    %40 = vector.multi_reduction <maximumf>, %39, %cst_19 [2] : vector<6x16x16xf32> to vector<6x16xf32>
    %41 = vector.shape_cast %40 : vector<6x16xf32> to vector<6x16x1xf32>
    %42 = vector.broadcast %41 : vector<6x16x1xf32> to vector<6x16x16xf32>
    %43 = arith.subf %39, %42 : vector<6x16x16xf32>
    %44 = math.exp %43 : vector<6x16x16xf32>
    %cst_20 = arith.constant dense<0.000000e+00> : vector<6x16xf32>
    %45 = vector.multi_reduction <add>, %44, %cst_20 [2] : vector<6x16x16xf32> to vector<6x16xf32>
    %46 = vector.shape_cast %45 : vector<6x16xf32> to vector<6x16x1xf32>
    %47 = tpu.reciprocal %46 {approx = true} : vector<6x16x1xf32> -> vector<6x16x1xf32>
    %48 = vector.broadcast %47 : vector<6x16x1xf32> to vector<6x16x16xf32>
    %49 = arith.mulf %44, %48 : vector<6x16x16xf32>
    %cst_21 = arith.constant dense<0.000000e+00> : vector<6x16x8xf32>
    %50 = tpu.matmul %49, %33, %cst_21 {dimension_numbers = #tpu.dot_dimension_numbers<[2], [1], [1], [2], [0, 0, 0, 1, 1, 2], [0], [0]>} : vector<6x16x16xf32>, vector<6x16x8xf32>, vector<6x16x8xf32> -> vector<6x16x8xf32>
    %c0_22 = arith.constant 0 : index
    %c0_23 = arith.constant 0 : index
    %c8 = arith.constant 8 : index
    %51 = vector.load %arg8[%c0_22, %c0_23, %c8] : memref<6x16x32xf32, #tpu.memory_space<vmem>>, vector<6x16x8xf32>
    tpu.vector_store %arg8[%c0_22, %c0_23, %c8], %50 {strides = array<i32>} : memref<6x16x32xf32, #tpu.memory_space<vmem>>, vector<6x16x8xf32>,
    %52 = vector.extract_strided_slice %7 {offsets = [0, 0, 16], sizes = [6, 16, 8], strides = [1, 1, 1]} : vector<6x16x32xf32> to vector<6x16x8xf32>
    %53 = vector.extract_strided_slice %8 {offsets = [0, 0, 16], sizes = [6, 16, 8], strides = [1, 1, 1]} : vector<6x16x32xf32> to vector<6x16x8xf32>
    %54 = vector.extract_strided_slice %9 {offsets = [0, 0, 16], sizes = [6, 16, 8], strides = [1, 1, 1]} : vector<6x16x32xf32> to vector<6x16x8xf32>
    %cst_24 = arith.constant dense<0.000000e+00> : vector<6x16x16xf32>
    %55 = tpu.matmul %52, %53, %cst_24 {dimension_numbers = #tpu.dot_dimension_numbers<[2], [2], [1], [1], [0, 0, 0, 1, 1, 1], [0], [0]>} : vector<6x16x8xf32>, vector<6x16x8xf32>, vector<6x16x16xf32> -> vector<6x16x16xf32>
    %c2 = arith.constant 2 : index
    %c0_25 = arith.constant 0 : index
    %c0_26 = arith.constant 0 : index
    %56 = vector.load %arg4[%c2, %c0_25, %c0_26] : memref<4x16x16xf32, #tpu.memory_space<vmem>>, vector<1x16x16xf32>
    %57 = vector.shape_cast %56 : vector<1x16x16xf32> to vector<16x16xf32>
    %58 = vector.shape_cast %57 : vector<16x16xf32> to vector<1x16x16xf32>
    %59 = vector.broadcast %58 : vector<1x16x16xf32> to vector<6x16x16xf32>
    %60 = arith.addf %55, %59 : vector<6x16x16xf32>
    %cst_27 = arith.constant dense<0xFF800000> : vector<6x16xf32>
    %61 = vector.multi_reduction <maximumf>, %60, %cst_27 [2] : vector<6x16x16xf32> to vector<6x16xf32>
    %62 = vector.shape_cast %61 : vector<6x16xf32> to vector<6x16x1xf32>
    %63 = vector.broadcast %62 : vector<6x16x1xf32> to vector<6x16x16xf32>
    %64 = arith.subf %60, %63 : vector<6x16x16xf32>
    %65 = math.exp %64 : vector<6x16x16xf32>
    %cst_28 = arith.constant dense<0.000000e+00> : vector<6x16xf32>
    %66 = vector.multi_reduction <add>, %65, %cst_28 [2] : vector<6x16x16xf32> to vector<6x16xf32>
    %67 = vector.shape_cast %66 : vector<6x16xf32> to vector<6x16x1xf32>
    %68 = tpu.reciprocal %67 {approx = true} : vector<6x16x1xf32> -> vector<6x16x1xf32>
    %69 = vector.broadcast %68 : vector<6x16x1xf32> to vector<6x16x16xf32>
    %70 = arith.mulf %65, %69 : vector<6x16x16xf32>
    %cst_29 = arith.constant dense<0.000000e+00> : vector<6x16x8xf32>
    %71 = tpu.matmul %70, %54, %cst_29 {dimension_numbers = #tpu.dot_dimension_numbers<[2], [1], [1], [2], [0, 0, 0, 1, 1, 2], [0], [0]>} : vector<6x16x16xf32>, vector<6x16x8xf32>, vector<6x16x8xf32> -> vector<6x16x8xf32>
    %c0_30 = arith.constant 0 : index
    %c0_31 = arith.constant 0 : index
    %c16 = arith.constant 16 : index
    %72 = vector.load %arg8[%c0_30, %c0_31, %c16] : memref<6x16x32xf32, #tpu.memory_space<vmem>>, vector<6x16x8xf32>
    tpu.vector_store %arg8[%c0_30, %c0_31, %c16], %71 {strides = array<i32>} : memref<6x16x32xf32, #tpu.memory_space<vmem>>, vector<6x16x8xf32>,
    %73 = vector.extract_strided_slice %7 {offsets = [0, 0, 24], sizes = [6, 16, 8], strides = [1, 1, 1]} : vector<6x16x32xf32> to vector<6x16x8xf32>
    %74 = vector.extract_strided_slice %8 {offsets = [0, 0, 24], sizes = [6, 16, 8], strides = [1, 1, 1]} : vector<6x16x32xf32> to vector<6x16x8xf32>
    %75 = vector.extract_strided_slice %9 {offsets = [0, 0, 24], sizes = [6, 16, 8], strides = [1, 1, 1]} : vector<6x16x32xf32> to vector<6x16x8xf32>
    %cst_32 = arith.constant dense<0.000000e+00> : vector<6x16x16xf32>
    %76 = tpu.matmul %73, %74, %cst_32 {dimension_numbers = #tpu.dot_dimension_numbers<[2], [2], [1], [1], [0, 0, 0, 1, 1, 1], [0], [0]>} : vector<6x16x8xf32>, vector<6x16x8xf32>, vector<6x16x16xf32> -> vector<6x16x16xf32>
    %c3 = arith.constant 3 : index
    %c0_33 = arith.constant 0 : index
    %c0_34 = arith.constant 0 : index
    %77 = vector.load %arg4[%c3, %c0_33, %c0_34] : memref<4x16x16xf32, #tpu.memory_space<vmem>>, vector<1x16x16xf32>
    %78 = vector.shape_cast %77 : vector<1x16x16xf32> to vector<16x16xf32>
    %79 = vector.shape_cast %78 : vector<16x16xf32> to vector<1x16x16xf32>
    %80 = vector.broadcast %79 : vector<1x16x16xf32> to vector<6x16x16xf32>
    %81 = arith.addf %76, %80 : vector<6x16x16xf32>
    %cst_35 = arith.constant dense<0xFF800000> : vector<6x16xf32>
    %82 = vector.multi_reduction <maximumf>, %81, %cst_35 [2] : vector<6x16x16xf32> to vector<6x16xf32>
    %83 = vector.shape_cast %82 : vector<6x16xf32> to vector<6x16x1xf32>
    %84 = vector.broadcast %83 : vector<6x16x1xf32> to vector<6x16x16xf32>
    %85 = arith.subf %81, %84 : vector<6x16x16xf32>
    %86 = math.exp %85 : vector<6x16x16xf32>
    %cst_36 = arith.constant dense<0.000000e+00> : vector<6x16xf32>
    %87 = vector.multi_reduction <add>, %86, %cst_36 [2] : vector<6x16x16xf32> to vector<6x16xf32>
    %88 = vector.shape_cast %87 : vector<6x16xf32> to vector<6x16x1xf32>
    %89 = tpu.reciprocal %88 {approx = true} : vector<6x16x1xf32> -> vector<6x16x1xf32>
    %90 = vector.broadcast %89 : vector<6x16x1xf32> to vector<6x16x16xf32>
    %91 = arith.mulf %86, %90 : vector<6x16x16xf32>
    %cst_37 = arith.constant dense<0.000000e+00> : vector<6x16x8xf32>
    %92 = tpu.matmul %91, %75, %cst_37 {dimension_numbers = #tpu.dot_dimension_numbers<[2], [1], [1], [2], [0, 0, 0, 1, 1, 2], [0], [0]>} : vector<6x16x16xf32>, vector<6x16x8xf32>, vector<6x16x8xf32> -> vector<6x16x8xf32>
    %c0_38 = arith.constant 0 : index
    %c0_39 = arith.constant 0 : index
    %c24 = arith.constant 24 : index
    %93 = vector.load %arg8[%c0_38, %c0_39, %c24] : memref<6x16x32xf32, #tpu.memory_space<vmem>>, vector<6x16x8xf32>
    tpu.vector_store %arg8[%c0_38, %c0_39, %c24], %92 {strides = array<i32>} : memref<6x16x32xf32, #tpu.memory_space<vmem>>, vector<6x16x8xf32>,
    %c0_40 = arith.constant 0 : index
    %c0_41 = arith.constant 0 : index
    %c0_42 = arith.constant 0 : index
    %94 = vector.load %arg8[%c0_40, %c0_41, %c0_42] : memref<6x16x32xf32, #tpu.memory_space<vmem>>, vector<6x16x32xf32>
    %c0_43 = arith.constant 0 : index
    %c0_44 = arith.constant 0 : index
    %95 = vector.load %arg5[%c0_43, %c0_44] : memref<32x32xf32, #tpu.memory_space<vmem>>, vector<32x32xf32>
    %cst_45 = arith.constant dense<0.000000e+00> : vector<6x16x32xf32>
    %96 = tpu.matmul %94, %95, %cst_45 {dimension_numbers = #tpu.dot_dimension_numbers<[2], [0], [0, 1], [1], [0, 0, 0, 1, 1, 1], [], []>} : vector<6x16x32xf32>, vector<32x32xf32>, vector<6x16x32xf32> -> vector<6x16x32xf32>
    %c0_46 = arith.constant 0 : index
    %c0_47 = arith.constant 0 : index
    %97 = vector.load %arg6[%c0_46, %c0_47] : memref<1x32xf32, #tpu.memory_space<vmem>>, vector<1x32xf32>
    %98 = vector.shape_cast %97 : vector<1x32xf32> to vector<1x1x32xf32>
    %99 = vector.broadcast %98 : vector<1x1x32xf32> to vector<6x16x32xf32>
    %100 = arith.addf %96, %99 : vector<6x16x32xf32>
    %c0_48 = arith.constant 0 : index
    %c0_49 = arith.constant 0 : index
    %c0_50 = arith.constant 0 : index
    %101 = vector.load %arg7[%c0_48, %c0_49, %c0_50] : memref<6x16x32xf32, #tpu.memory_space<vmem>>, vector<6x16x32xf32>
    tpu.vector_store %arg7[%c0_48, %c0_49, %c0_50], %100 {strides = array<i32>} : memref<6x16x32xf32, #tpu.memory_space<vmem>>, vector<6x16x32xf32>,
    return
  }
  func.func @transform_0(%arg0: i32) -> (i32, i32, i32) {
    %c0_i32 = arith.constant 0 : i32
    %c0_i32_0 = arith.constant 0 : i32
    %c0_i32_1 = arith.constant 0 : i32
    return %arg0, %c0_i32, %c0_i32_0 : i32, i32, i32
  }
  func.func @transform_1(%arg0: i32) -> (i32, i32) {
    %c0_i32 = arith.constant 0 : i32
    %c0_i32_0 = arith.constant 0 : i32
    %c0_i32_1 = arith.constant 0 : i32
    return %c0_i32, %c0_i32_0 : i32, i32
  }
  func.func @transform_2(%arg0: i32) -> (i32, i32) {
    %c0_i32 = arith.constant 0 : i32
    %c0_i32_0 = arith.constant 0 : i32
    %c0_i32_1 = arith.constant 0 : i32
    return %c0_i32, %c0_i32_0 : i32, i32
  }
  func.func @transform_3(%arg0: i32) -> (i32, i32, i32) {
    %c0_i32 = arith.constant 0 : i32
    %c0_i32_0 = arith.constant 0 : i32
    %c0_i32_1 = arith.constant 0 : i32
    %c0_i32_2 = arith.constant 0 : i32
    return %c0_i32, %c0_i32_0, %c0_i32_1 : i32, i32, i32
  }
  func.func @transform_4(%arg0: i32) -> (i32, i32) {
    %c0_i32 = arith.constant 0 : i32
    %c0_i32_0 = arith.constant 0 : i32
    %c0_i32_1 = arith.constant 0 : i32
    return %c0_i32, %c0_i32_0 : i32, i32
  }
  func.func @transform_5(%arg0: i32) -> (i32, i32) {
    %c0_i32 = arith.constant 0 : i32
    %c0_i32_0 = arith.constant 0 : i32
    %c0_i32_1 = arith.constant 0 : i32
    return %c0_i32, %c0_i32_0 : i32, i32
  }
  func.func @transform_6(%arg0: i32) -> (i32, i32, i32) {
    %c0_i32 = arith.constant 0 : i32
    %c0_i32_0 = arith.constant 0 : i32
    %c0_i32_1 = arith.constant 0 : i32
    return %arg0, %c0_i32, %c0_i32_0 : i32, i32, i32
  }
}

</mosaic_0001>

<bundles_post_ra>
// kernel: tpu_custom_call.1
= control target key start
LH: loop header
LB: loop body
LE: loop exit
PB: predicated region body
PF: predicated region fallthrough
CT: control target
= control target key end

     0   :  { %11 = vsyncpa [#allocation4], 0  ;;  %s8285_s0 = inlined_call_operand.hbm [shape: f32[6,16,32], index: 0, kind: input, shape index: {}]   ;;  %s8286_s1 = inlined_call_operand.hbm [shape: f32[32,96], index: 1, kind: input, shape index: {}]   ;;  %s8287_s2 = inlined_call_operand.vmem [shape: f32[1,96], index: 2, kind: input, shape index: {}]   ;;  %s8288_s3 = inlined_call_operand.hbm [shape: f32[4,16,16], index: 3, kind: input, shape index: {}]   ;;  %s8289_s4 = inlined_call_operand.hbm [shape: f32[32,32], index: 4, kind: input, shape index: {}]   ;;  %s8290_s5 = inlined_call_operand.vmem [shape: f32[1,32], index: 5, kind: input, shape index: {}]   ;;  %s8291_s6 = inlined_call_operand.hbm [shape: f32[6,16,32], index: 6, kind: output, shape index: {}]  }
   0x1   :  { %12 = vsyncpa [#allocation7], 0 }
   0x2   :  { %13 = vsyncpa [#allocation10], 0 }
   0x3   :  { %14 = vsyncpa [#allocation5], 0  ;;  %s7087_s21 = smov [#allocation6]   ;;  %s7088_s23 = smov [#allocation3]  }
   0x4   :  { %s32_s22 = sshll.u32 %s7087_s21, 4  ;;  %s20_s24 = sshll.u32 %s7088_s23, 4  ;;  %s33_s22 = int_to_ptr.vmem [resolvable:$true] %s32_s22  ;;  %s7142_s24 = int_to_ptr.vmem [resolvable:$true] %s20_s24 }
   0x5   :  { %s6969_s27 = scalar_lea.hbm %s8286_s1, 512 }
   0x6   :  { %p6970_p0 = scmp.ne.s32.totalorder %s8286_s1, %s6969_s27  ;;  %p6973_p1 = scmp.lt.u32.totalorder %s6969_s27, %s8286_s1 }
   0x8   :  { %p6975_p2 = pnand %p6973_p1, %p6970_p0 }
   0xa   :  { %6978 = shalt.err (!%p6975_p2)
}
   0xb   :  { %s6979_s8 = scalar_lea.vmem %s33_s22, 512  ;;  %p6984_p4 = scmp.lt.s32.totalorder %s33_s22, %s33_s22 }
   0xc   :  { %p6980_p3 = scmp.ne.s32.totalorder %s33_s22, %s6979_s8  ;;  %p6985_p5 = scmp.lt.s32.totalorder %s6979_s8, %s6979_s8 }
   0xe   :  { %p6986_p6 = por %p6985_p5, %p6984_p4 }
  0x10   :  { %p6987_p7 = pnand %p6986_p6, %p6980_p3 }
  0x12   :  { %6990 = shalt.err (!%p6987_p7)
}
  0x13   :  { %s7089_s9 = smov 128   ;;  %s7090_s10 = smov 8  }
  0x14   :  { %38 = dma.hbm_to_vmem [thread:$0]  %s8286_s1, 512, %s33_s22, [#allocation7], %s7089_s9, %s7089_s9, %s7090_s10  }
  0x15   :  { %s6991_s15 = scalar_lea.hbm %s8285_s0, 1536 }
  0x16   :  { %p6992_p8 = scmp.ne.s32.totalorder %s8285_s0, %s6991_s15  ;;  %p6995_p9 = scmp.lt.u32.totalorder %s6991_s15, %s8285_s0 }
  0x18   :  { %p6997_p10 = pnand %p6995_p9, %p6992_p8 }
  0x1a   :  { %7000 = shalt.err (!%p6997_p10)
}
  0x1b   :  { %s7001_s20 = scalar_lea.vmem %s7142_s24, 1536  ;;  %p7006_p12 = scmp.lt.s32.totalorder %s7142_s24, %s7142_s24 }
  0x1c   :  { %p7002_p11 = scmp.ne.s32.totalorder %s7142_s24, %s7001_s20  ;;  %p7007_p13 = scmp.lt.s32.totalorder %s7001_s20, %s7001_s20 }
  0x1e   :  { %p7008_p0 = por %p7007_p13, %p7006_p12 }
  0x20   :  { %p7009_p1 = pnand %p7008_p0, %p7002_p11 }
  0x22   :  { %7012 = shalt.err (!%p7009_p1)
}
  0x23   :  { %26 = dma.hbm_to_vmem [thread:$0]  %s8285_s0, 1536, %s7142_s24, [#allocation4], %s7089_s9, %s7089_s9, %s7090_s10  }
  0x24   :  { %s7091_s22 = smov [#allocation8]   ;;  %s7092_s25 = smov [#allocation9]  }
  0x25   :  { %s46_s23 = sshll.u32 %s7091_s22, 4  ;;  %s58_s26 = sshll.u32 %s7092_s25, 4  ;;  %s47_s23 = int_to_ptr.vmem [resolvable:$true] %s46_s23  ;;  %s7179_s26 = int_to_ptr.vmem [resolvable:$true] %s58_s26 }
  0x26   :  { %s7013_s29 = scalar_lea.hbm %s8288_s3, 1024 }
  0x27   :  { %p7014_p2 = scmp.ne.s32.totalorder %s8288_s3, %s7013_s29  ;;  %p7017_p3 = scmp.lt.u32.totalorder %s7013_s29, %s8288_s3 }
  0x29   :  { %p7019_p4 = pnand %p7017_p3, %p7014_p2 }
  0x2b   :  { %7022 = shalt.err (!%p7019_p4)
}
  0x2c   :  { %s7023_s0 = scalar_lea.vmem %s47_s23, 1024  ;;  %p7028_p6 = scmp.lt.s32.totalorder %s47_s23, %s47_s23 }
  0x2d   :  { %p7024_p5 = scmp.ne.s32.totalorder %s47_s23, %s7023_s0  ;;  %p7029_p7 = scmp.lt.s32.totalorder %s7023_s0, %s7023_s0 }
  0x2f   :  { %p7030_p8 = por %p7029_p7, %p7028_p6 }
  0x31   :  { %p7031_p9 = pnand %p7030_p8, %p7024_p5 }
  0x33   :  { %7034 = shalt.err (!%p7031_p9)
}
  0x34   :  { %52 = dma.hbm_to_vmem [thread:$0]  %s8288_s3, 1024, %s47_s23, [#allocation7], %s7089_s9, %s7089_s9, %s7090_s10  }
  0x35   :  { %s7035_s15 = scalar_lea.hbm %s8289_s4, 512 }
  0x36   :  { %p7036_p10 = scmp.ne.s32.totalorder %s8289_s4, %s7035_s15  ;;  %p7039_p11 = scmp.lt.u32.totalorder %s7035_s15, %s8289_s4 }
  0x38   :  { %p7041_p12 = pnand %p7039_p11, %p7036_p10 }
  0x3a   :  { %7044 = shalt.err (!%p7041_p12)
}
  0x3b   :  { %s7045_s20 = scalar_lea.vmem %s7179_s26, 512  ;;  %p7050_p0 = scmp.lt.s32.totalorder %s7179_s26, %s7179_s26 }
  0x3c   :  { %p7046_p13 = scmp.ne.s32.totalorder %s7179_s26, %s7045_s20  ;;  %p7051_p1 = scmp.lt.s32.totalorder %s7045_s20, %s7045_s20 }
  0x3e   :  { %p7052_p2 = por %p7051_p1, %p7050_p0 }
  0x40   :  { %p7053_p3 = pnand %p7052_p2, %p7046_p13 }
  0x42   :  { %7056 = shalt.err (!%p7053_p3)
}
  0x43   :  { %64 = dma.hbm_to_vmem [thread:$0]  %s8289_s4, 512, %s7179_s26, [#allocation10], %s7089_s9, %s7089_s9, %s7090_s10  }
  0x44   :  { %7079 = dma.done.wait [#allocation4], 1536  }
  0x45   :  { %7080 = vsyncadd [#allocation4], 4294965760 }
  0x46   :  { %7081 = dma.done.wait [#allocation7], 1536  }
  0x47   :  { %7082 = vsyncadd [#allocation7], 4294965760 }
  0x48   :  { %7083 = dma.done.wait [#allocation10], 512  }
  0x49   :  { %7084 = vsyncadd [#allocation10], 4294966784  ;;  %vm102_vm0 = vcmask 261120   ;;  %v91_v0 = vld [vmem:[#allocation6] sm:$0xff]  ;;  %v92_v1 = vld [vmem:[#allocation6 + $0x8] sm:$0xff]  ;;  %vm272_vm1 = vcmask 64512  }
  0x4a   :  { %v93_v2 = vld [vmem:[#allocation6 + $0x10] sm:$0xff]  ;;  %v6257_v3 = vpack.c.bf16 %v92_v1, %v91_v0  ;;  %v94_v4 = vld [vmem:[#allocation6 + $0x18] sm:$0xff]  ;;  %v79_v5 = vld [vmem:[#allocation3] sm:$0xff]  ;;  %s7094_s22 = smov 64   ;;  %vm801_vm3 = vcmask 130048   ;;  %s7095_s23 = smov 88  }
  0x4b   :  { %v83_v6 = vld [vmem:[#allocation3 + $0x20] sm:$0xff]  ;;  %v6261_v7 = vpack.c.bf16 %v94_v4, %v93_v2  ;;  %5877 = vmatprep.mubr.msk.f32.mxu0 %vm102_vm0, %v79_v5  ;;  %v80_v8 = vld [vmem:[#allocation3 + $0x8] sm:$0xff]  ;;  %v85_v10 = vld [vmem:[#allocation3 + $0x30] sm:$0xff]  ;;  %s7096_s25 = smov 120   ;;  %s7097_s26 = smov 56   ;;  %vm2719_vm4 = vcmask 130112  }
  0x4c   :  { %5883 = vmatprep.mubr.msk.f32.mxu1 %vm102_vm0, %v83_v6  ;;  %6258 = vmatprep.subr.bf16.mxu0 %v6257_v3  ;;  %v84_v9 = vld [vmem:[#allocation3 + $0x28] sm:$0xff]  ;;  %v81_v11 = vld [vmem:[#allocation3 + $0x10] sm:$0xff]  ;;  %v86_v12 = vld [vmem:[#allocation3 + $0x38] sm:$0xff]  ;;  %s7098_s27 = smov 80   ;;  %s7099_s28 = smov 112   ;;  %vm3983_vm5 = vcmask 195712  }
  0x4d   :  { %6513 = vmatprep.subr.bf16.mxu1 %v6257_v3  ;;  %6260 = vmatpush3.bf16.msra.mxu0 %v6257_v3  ;;  %v82_v13 = vld [vmem:[#allocation3 + $0x18] sm:$0xff]  ;;  %v87_v14 = vld [vmem:[#allocation3 + $0x40] sm:$0xff]  ;;  %v88_v15 = vld [vmem:[#allocation3 + $0x48] sm:$0xff]  ;;  %s7100_s29 = smov 48   ;;  %s7101_s30 = smov 72   ;;  %vm5247_vm6 = vcmask 261312  }
  0x4e   :  { %6515 = vmatpush3.bf16.msra.mxu1 %v6257_v3  ;;  %6262 = vmatprep.subr.bf16.mxu0 %v6261_v7  ;;  %v89_v16 = vld [vmem:[#allocation3 + $0x50] sm:$0xff]  ;;  %v90_v17 = vld [vmem:[#allocation3 + $0x58] sm:$0xff]  ;;  %v5475_v18 = vld [vmem:[%s8287_s2] ss:$0 sm:$0xff]  ;;  %s7093_s2 = smov 96   ;;  %s7102_s7 = smov 104  }
  0x4f   :  { %6514 = vmatprep.subr.bf16.mxu1 %v6261_v7  ;;  %vm7297_vm2 = vmpackc.low %vm272_vm1, %vm272_vm1  ;;  %s7103_s8 = smov 40   ;;  %s7104_s11 = smov 16  }
  0x50   :  { %s7105_s0 = smov 24  }
  0x51   :  { %6264 = vmatpush3.bf16.msra.mxu0 %v6261_v7 }
  0x52   :  { %6516 = vmatpush3.bf16.msra.mxu1 %v6261_v7 }
  0x54   :  { %5878 = vmatmul.mubr.msk.f32.vlgmr.msra.gmra.mrb[0].mxu0 %vm102_vm0, %v80_v8 }
  0x55   :  { %5884 = vmatmul.mubr.msk.f32.vlgmr.msra.gmra.mrb[0].mxu1 %vm102_vm0, %v84_v9  ;;  %5880 = vmatprep.mubr.msk.f32.mxu0 %vm102_vm0, %v81_v11 }
  0x56   :  { %5886 = vmatprep.mubr.msk.f32.mxu1 %vm102_vm0, %v85_v10 }
  0x58   :  { %5881 = vmatmul.mubr.msk.f32.gmra.mrb[2].mxu0 %vm102_vm0, %v82_v13 }
  0x59   :  { %5887 = vmatmul.mubr.msk.f32.gmra.mrb[2].mxu1 %vm102_vm0, %v86_v12 }
  0x5a   :  { %5889 = vmatprep.mubr.msk.f32.mxu1 %vm102_vm0, %v87_v14 }
  0x5d   :  { %5890 = vmatmul.mubr.msk.f32.gmra.mrb[4].mxu1 %vm102_vm0, %v88_v15 }
  0x5e   :  { %5892 = vmatprep.mubr.msk.f32.mxu1 %vm102_vm0, %v89_v16 }
  0x61   :  { %5893 = vmatmul.mubr.msk.f32.gmra.mrb[6].mxu1 %vm102_vm0, %v90_v17 }
 0x127   :  { %v5879_v19 = vpop.f32.mrb[0].mxu0 }
 0x128   :  { %v5885_v20 = vpop.f32.mrb[0].mxu1  ;;  %v7231_v21 = vadd.f32 %v5879_v19, %v5475_v18  ;;  %v205_v23 = vpop.f32.mrb[1].mxu0 }
 0x129   :  { %v7233_v22 = vadd.f32 %v5885_v20, %v5475_v18  ;;  %v225_v24 = vpop.f32.mrb[1].mxu1  ;;  %v7235_v25 = vadd.f32 %v5475_v18, %v205_v23 }
 0x12a   :  { %v7237_v26 = vadd.f32 %v5475_v18, %v225_v24 }
 0x12b   :  { %5899 = vmatprep.mubr.msk.f32.mxu1 %vm272_vm1, %v7235_v25  ;;  %v5882_v28 = vpop.f32.mrb[2].mxu0  ;;  %v7247_v30 = vpack.i.bf16 %v7231_v21, %v7235_v25 }
 0x12c   :  { %v5888_v27 = vpop.f32.mrb[2].mxu1  ;;  %v7243_v29 = vpack.i.bf16 %v7233_v22, %v7237_v26  ;;  %v7251_v32 = vadd.f32 %v5882_v28, %v5475_v18  ;;  %v215_v34 = vpop.f32.mrb[3].mxu0 }
 0x12d   :  { %v7249_v31 = vadd.f32 %v5888_v27, %v5475_v18  ;;  %v235_v33 = vpop.f32.mrb[3].mxu1  ;;  %v7256_v36 = vadd.f32 %v5475_v18, %v215_v34  ;;  %6538 = vrot.lane.b32.xlu0 %v7247_v30, %s7093_s2  ;;  %v265_v34 = vld [vmem:[#allocation8 + $0x8] sm:$0xff] }
 0x12e   :  { %v7253_v35 = vadd.f32 %v5475_v18, %v235_v33  ;;  %6548 = vrot.lane.b32.xlu1 %v7243_v29, %s7093_s2 }
 0x12f   :  { %v7265_v39 = vpack.i.bf16 %v7251_v32, %v7256_v36 }
 0x130   :  { %v5891_v37 = vpop.f32.mrb[4].mxu1  ;;  %v7261_v38 = vpack.i.bf16 %v7249_v31, %v7253_v35  ;;  %5920 = vmatprep.mubr.msk.f32.mxu0 %vm272_vm1, %v7253_v35 }
 0x131   :  { %v7269_v40 = vadd.f32 %v5891_v37, %v5475_v18  ;;  %v245_v41 = vpop.f32.mrb[5].mxu1  ;;  %6543 = vrot.lane.b32.xlu0 %v7265_v39, %s7093_s2  ;;  %v264_v37 = vld [vmem:[#allocation8] sm:$0xff] }
 0x132   :  { %v7271_v42 = vadd.f32 %v5475_v18, %v245_v41  ;;  %6553 = vrot.lane.b32.xlu1 %v7261_v38, %s7093_s2 }
 0x134   :  { %v5894_v43 = vpop.f32.mrb[6].mxu1  ;;  %v7277_v44 = vpack.i.bf16 %v7269_v40, %v7271_v42 }
 0x135   :  { %v7279_v45 = vadd.f32 %v5894_v43, %v5475_v18  ;;  %v255_v46 = vpop.f32.mrb[7].mxu1 }
 0x136   :  { %v7281_v47 = vadd.f32 %v5475_v18, %v255_v46  ;;  %6558 = vrot.lane.b32.xlu0 %v7277_v44, %s7093_s2 }
 0x138   :  { %v7286_v48 = vpack.i.bf16 %v7279_v45, %v7281_v47 }
 0x13a   :  { %6563 = vrot.lane.b32.xlu1 %v7286_v48, %s7093_s2  ;;  %6573 = vrot.lane.b32.xlu0 %v7265_v39, %s7094_s22 }
 0x13e   :  { %6568 = vrot.lane.b32.xlu1 %v7247_v30, %s7094_s22  ;;  %6588 = vrot.lane.b32.xlu0 %v7277_v44, %s7094_s22 }
 0x142   :  { %6578 = vrot.lane.b32.xlu1 %v7243_v29, %s7094_s22 }
 0x146   :  { %6583 = vrot.lane.b32.xlu1 %v7261_v38, %s7094_s22 }
 0x14a   :  { %6593 = vrot.lane.b32.xlu1 %v7286_v48, %s7094_s22 }
 0x19f   :  { %v6539_v50 = vpop.permute.xlu0 %6538 }
 0x1a0   :  { %v6549_v49 = vpop.permute.xlu1 %6548  ;;  %v6541_v51 = vunpack.i.h.bf16 %v6539_v50  ;;  %v6540_v52 = vunpack.i.l.bf16 %v6539_v50 }
 0x1a1   :  { %v6551_v0 = vunpack.i.h.bf16 %v6549_v49  ;;  %v6550_v1 = vunpack.i.l.bf16 %v6549_v49 }
 0x1a2   :  { %v6265_v54 = vpack.c.bf16 %v6541_v51, %v6540_v52 }
 0x1a3   :  { %v6544_v56 = vpop.permute.xlu0 %6543  ;;  %v6277_v4 = vpack.c.bf16 %v6551_v0, %v6550_v1 }
 0x1a4   :  { %v6554_v55 = vpop.permute.xlu1 %6553  ;;  %v6546_v59 = vunpack.i.h.bf16 %v6544_v56  ;;  %v6545_v60 = vunpack.i.l.bf16 %v6544_v56  ;;  %6267 = vmatprep.subr.msk.bf16.mxu1 %vm7297_vm2, %v6265_v54 }
 0x1a5   :  { %v6556_v57 = vunpack.i.h.bf16 %v6554_v55  ;;  %v6555_v58 = vunpack.i.l.bf16 %v6554_v55  ;;  %6270 = vmatpush3.bf16.xpose.msk.msra.mxu1 %vm7297_vm2, %v6265_v54 }
 0x1a6   :  { %v6271_v62 = vpack.c.bf16 %v6546_v59, %v6545_v60 }
 0x1a7   :  { %v6283_v61 = vpack.c.bf16 %v6556_v57, %v6555_v58 }
 0x1a8   :  { %v6559_v63 = vpop.permute.xlu0 %6558  ;;  %6273 = vmatprep.subr.msk.bf16.mxu1 %vm7297_vm2, %v6271_v62 }
 0x1a9   :  { %6285 = vmatprep.subr.msk.bf16.mxu0 %vm7297_vm2, %v6283_v61  ;;  %v6561_v8 = vunpack.i.h.bf16 %v6559_v63  ;;  %v6560_v9 = vunpack.i.l.bf16 %v6559_v63 }
 0x1aa   :  { %6288 = vmatpush3.bf16.xpose.msk.msra.mxu0 %vm7297_vm2, %v6283_v61 }
 0x1ab   :  { %v6289_v12 = vpack.c.bf16 %v6561_v8, %v6560_v9 }
 0x1ac   :  { %v6564_v2 = vpop.permute.xlu1 %6563  ;;  %v6574_v3 = vpop.permute.xlu0 %6573  ;;  %5900 = vmatmul.mubr.msk.f32.vlgmr.msra.gmra.mrb[8].mxu1 %vm272_vm1, %v7231_v21 }
 0x1ad   :  { %v6566_v5 = vunpack.i.h.bf16 %v6564_v2  ;;  %v6565_v6 = vunpack.i.l.bf16 %v6564_v2  ;;  %6276 = vmatpush3.bf16.xpose.msk.msra.mxu1 %vm7297_vm2, %v6271_v62  ;;  %5906 = vmatprep.mubr.msk.f32.mxu1 %vm272_vm1, %v7256_v36  ;;  %v6576_v27 = vunpack.i.h.bf16 %v6574_v3  ;;  %v6575_v28 = vunpack.i.l.bf16 %v6574_v3 }
 0x1ae   :  { %6279 = vmatprep.subr.msk.bf16.mxu1 %vm7297_vm2, %v6277_v4 }
 0x1af   :  { %v6295_v7 = vpack.c.bf16 %v6566_v5, %v6565_v6  ;;  %v7348_v33 = vpack.c.bf16 %v6576_v27, %v6575_v28 }
 0x1b0   :  { %v6569_v10 = vpop.permute.xlu1 %6568  ;;  %v6589_v11 = vpop.permute.xlu0 %6588 }
 0x1b1   :  { %5921 = vmatmul.mubr.msk.f32.vlgmr.msra.gmra.mrb[4].mxu0 %vm272_vm1, %v7249_v31  ;;  %6297 = vmatprep.subr.msk.bf16.mxu0 %vm7297_vm2, %v6295_v7  ;;  %v6591_v14 = vunpack.i.h.bf16 %v6589_v11  ;;  %v6590_v15 = vunpack.i.l.bf16 %v6589_v11  ;;  %v6571_v19 = vunpack.i.h.bf16 %v6569_v10  ;;  %v6570_v20 = vunpack.i.l.bf16 %v6569_v10 }
 0x1b2   :  { %6300 = vmatpush3.bf16.xpose.msk.msra.mxu0 %vm7297_vm2, %v6295_v7  ;;  %5934 = vmatprep.mubr.msk.f32.mxu0 %vm272_vm1, %v7281_v47 }
 0x1b3   :  { %v7337_v23 = vpack.c.bf16 %v6591_v14, %v6590_v15  ;;  %v6301_v24 = vpack.c.bf16 %v6571_v19, %v6570_v20 }
 0x1b4   :  { %v6579_v13 = vpop.permute.xlu1 %6578  ;;  %5907 = vmatmul.mubr.msk.f32.vlgmr.msra.gmra.mrb[10].mxu1 %vm272_vm1, %v7251_v32 }
 0x1b5   :  { %v6581_v16 = vunpack.i.h.bf16 %v6579_v13  ;;  %v6580_v17 = vunpack.i.l.bf16 %v6579_v13  ;;  %6282 = vmatpush3.bf16.xpose.msk.msra.mxu1 %vm7297_vm2, %v6277_v4  ;;  %5913 = vmatprep.mubr.msk.f32.mxu1 %vm272_vm1, %v7237_v26 }
 0x1b6   :  { %6291 = vmatprep.subr.msk.bf16.mxu1 %vm7297_vm2, %v6289_v12 }
 0x1b7   :  { %v6309_v18 = vpack.c.bf16 %v6581_v16, %v6580_v17 }
 0x1b8   :  { %v7379_v19 = vpop.permute.xlu1 %6583 }
 0x1b9   :  { %5935 = vmatmul.mubr.msk.f32.vlgmr.msra.gmra.mrb[6].mxu0 %vm272_vm1, %v7279_v45  ;;  %6310 = vmatprep.subr.bf16.mxu0 %v6309_v18 }
 0x1ba   :  { %6312 = vmatpush3.bf16.msra.mxu0 %v6309_v18 }
 0x1bb   :  { %6318 = vmatprep.subr.bf16.mxu0 %v7337_v23 }
 0x1bc   :  { %5914 = vmatmul.mubr.msk.f32.vlgmr.msra.gmra.mrb[12].mxu1 %vm272_vm1, %v7233_v22  ;;  %v7381_v20 = vpop.permute.xlu1 %6593 }
 0x1bd   :  { %6294 = vmatpush3.bf16.xpose.msk.msra.mxu1 %vm7297_vm2, %v6289_v12  ;;  %5927 = vmatprep.mubr.msk.f32.mxu1 %vm272_vm1, %v7271_v42 }
 0x1be   :  { %6302 = vmatprep.subr.bf16.mxu1 %v6301_v24 }
 0x1c4   :  { %5928 = vmatmul.mubr.msk.f32.vlgmr.msra.gmra.mrb[14].mxu1 %vm272_vm1, %v7269_v40 }
 0x1c5   :  { %6304 = vmatpush3.bf16.msra.mxu1 %v6301_v24 }
 0x1c6   :  { %6306 = vmatprep.subr.bf16.mxu1 %v7348_v33 }
 0x27f   :  { %v5901_v41 = vpop.f32.mrb[8].mxu1 }
 0x280   :  { %v353_v43 = vadd.f32 %v5901_v41, %v265_v34  ;;  %v347_v46 = vpop.f32.mrb[9].mxu1 }
 0x281   :  { %v348_v49 = vadd.f32 %v347_v46, %v264_v37 }
 0x282   :  { %v805_v50 = vsel %vm801_vm3, %v353_v43, -inf }
 0x283   :  { %806 = vmax.xlane.f32.xlu1 %v805_v50  ;;  %v802_v52 = vsel %vm801_vm3, %v348_v49, -inf }
 0x284   :  { %v5922_v51 = vpop.f32.mrb[4].mxu0  ;;  %803 = vmax.xlane.f32.xlu0 %v802_v52 }
 0x285   :  { %v620_v54 = vadd.f32 %v5922_v51, %v265_v34  ;;  %v614_v55 = vpop.f32.mrb[5].mxu0 }
 0x286   :  { %v615_v56 = vadd.f32 %v614_v55, %v264_v37 }
 0x287   :  { %v823_v57 = vsel %vm801_vm3, %v620_v54, -inf  ;;  %v5908_v58 = vpop.f32.mrb[10].mxu1 }
 0x288   :  { %v820_v59 = vsel %vm801_vm3, %v615_v56, -inf  ;;  %v442_v60 = vadd.f32 %v5908_v58, %v265_v34  ;;  %v436_v61 = vpop.f32.mrb[11].mxu1  ;;  %824 = vmax.xlane.f32.xlu0 %v823_v57 }
 0x289   :  { %821 = vmax.xlane.f32.xlu1 %v820_v59  ;;  %v437_v62 = vadd.f32 %v436_v61, %v264_v37 }
 0x28a   :  { %v811_v63 = vsel %vm801_vm3, %v442_v60, -inf }
 0x28b   :  { %v808_v1 = vsel %vm801_vm3, %v437_v62, -inf }
 0x28c   :  { %v5936_v0 = vpop.f32.mrb[6].mxu0  ;;  %809 = vmax.xlane.f32.xlu0 %v808_v1 }
 0x28d   :  { %v798_v2 = vadd.f32 %v5936_v0, %v265_v34  ;;  %v792_v3 = vpop.f32.mrb[7].mxu0  ;;  %812 = vmax.xlane.f32.xlu1 %v811_v63 }
 0x28e   :  { %v793_v4 = vadd.f32 %v792_v3, %v264_v37 }
 0x28f   :  { %v835_v5 = vsel %vm801_vm3, %v798_v2, -inf  ;;  %v5915_v6 = vpop.f32.mrb[12].mxu1 }
 0x290   :  { %v832_v7 = vsel %vm801_vm3, %v793_v4, -inf  ;;  %v7359_v8 = vadd.f32 %v5915_v6, %v265_v34  ;;  %v525_v9 = vpop.f32.mrb[13].mxu1  ;;  %836 = vmax.xlane.f32.xlu0 %v835_v5 }
 0x291   :  { %833 = vmax.xlane.f32.xlu1 %v832_v7  ;;  %v7363_v11 = vadd.f32 %v525_v9, %v264_v37 }
 0x292   :  { %v817_v10 = vsel %vm801_vm3, %v7359_v8, -inf }
 0x293   :  { %v814_v13 = vsel %vm801_vm3, %v7363_v11, -inf }
 0x294   :  { %818 = vmax.xlane.f32.xlu0 %v817_v10 }
 0x297   :  { %v5929_v12 = vpop.f32.mrb[14].mxu1 }
 0x298   :  { %v7367_v14 = vadd.f32 %v5929_v12, %v265_v34  ;;  %v703_v15 = vpop.f32.mrb[15].mxu1  ;;  %815 = vmax.xlane.f32.xlu0 %v814_v13 }
 0x299   :  { %v7369_v16 = vadd.f32 %v703_v15, %v264_v37 }
 0x29a   :  { %v829_v17 = vsel %vm801_vm3, %v7367_v14, -inf }
 0x29b   :  { %v826_v18 = vsel %vm801_vm3, %v7369_v16, -inf }
 0x29c   :  { %827 = vmax.xlane.f32.xlu1 %v826_v18  ;;  %830 = vmax.xlane.f32.xlu0 %v829_v17 }
 0x2ad   :  { %6603 = vrot.lane.b32.xlu1 %v7265_v39, %s7095_s23 }
 0x2b2   :  { %6598 = vrot.lane.b32.xlu0 %v7247_v30, %s7095_s23 }
 0x310   :  { %v807_v24 = vpop.xlane.xlu1 %806 }
 0x311   :  { %v839_v27 = vsub.f32 %v353_v43, %v807_v24  ;;  %v804_v28 = vpop.xlane.xlu0 %803 }
 0x312   :  { %v838_v34 = vsub.f32 %v348_v49, %v804_v28 }
 0x313   :  { %v852_v37 = vmul.f32 1.442695, %v839_v27 }
 0x314   :  { %v850_v41 = vmul.f32 1.442695, %v838_v34 }
 0x315   :  { %6777 = vpow2.f32 %v852_v37  ;;  %v825_v50 = vpop.xlane.xlu0 %824 }
 0x316   :  { %v822_v46 = vpop.xlane.xlu1 %821  ;;  %6779 = vpow2.f32 %v850_v41  ;;  %v845_v52 = vsub.f32 %v620_v54, %v825_v50 }
 0x317   :  { %v844_v51 = vsub.f32 %v615_v56, %v822_v46 }
 0x318   :  { %v864_v57 = vmul.f32 1.442695, %v845_v52 }
 0x319   :  { %v862_v55 = vmul.f32 1.442695, %v844_v51  ;;  %v810_v59 = vpop.xlane.xlu0 %809 }
 0x31a   :  { %v813_v58 = vpop.xlane.xlu1 %812  ;;  %v840_v63 = vsub.f32 %v437_v62, %v810_v59 }
 0x31b   :  { %6781 = vpow2.f32 %v862_v55  ;;  %v841_v61 = vsub.f32 %v442_v60, %v813_v58 }
 0x31c   :  { %6783 = vpow2.f32 %v864_v57  ;;  %v854_v43 = vmul.f32 1.442695, %v840_v63 }
 0x31d   :  { %v856_v0 = vmul.f32 1.442695, %v841_v61  ;;  %v837_v49 = vpop.xlane.xlu0 %836 }
 0x31e   :  { %v834_v1 = vpop.xlane.xlu1 %833  ;;  %v849_v5 = vsub.f32 %v798_v2, %v837_v49 }
 0x31f   :  { %6785 = vpow2.f32 %v856_v0  ;;  %v848_v3 = vsub.f32 %v793_v4, %v834_v1  ;;  %v7383_v6 = vpop.eup %6777 }
 0x320   :  { %v7385_v7 = vpop.eup %6779  ;;  %6787 = vpow2.f32 %v854_v43  ;;  %v872_v56 = vmul.f32 1.442695, %v849_v5  ;;  %v877_v9 = vsel %vm801_vm3, %v7383_v6, 0.0 }
 0x321   :  { %v870_v54 = vmul.f32 1.442695, %v848_v3  ;;  %878 = vadd.xlane.f32.xlu0 %v877_v9  ;;  %v819_v60 = vpop.xlane.xlu0 %818  ;;  %v874_v62 = vsel %vm801_vm3, %v7385_v7, 0.0 }
 0x322   :  { %v843_v10 = vsub.f32 %v7359_v8, %v819_v60  ;;  %875 = vadd.xlane.f32.xlu1 %v874_v62  ;;  %6789 = vpow2.f32 %v872_v56 }
 0x323   :  { %6791 = vpow2.f32 %v870_v54 }
 0x324   :  { %v860_v4 = vmul.f32 1.442695, %v843_v10 }
 0x325   :  { %v7392_v2 = vpop.eup %6781  ;;  %v816_v13 = vpop.xlane.xlu0 %815 }
 0x326   :  { %v7394_v12 = vpop.eup %6783  ;;  %v892_v15 = vsel %vm801_vm3, %v7392_v2, 0.0  ;;  %6793 = vpow2.f32 %v860_v4  ;;  %v842_v17 = vsub.f32 %v7363_v11, %v816_v13  ;;  %v6586_v4 = vunpack.i.h.bf16 %v7379_v19 }
 0x327   :  { %893 = vadd.xlane.f32.xlu1 %v892_v15  ;;  %v895_v18 = vsel %vm801_vm3, %v7394_v12, 0.0  ;;  %v6585_v13 = vunpack.i.l.bf16 %v7379_v19 }
 0x328   :  { %896 = vadd.xlane.f32.xlu0 %v895_v18  ;;  %v858_v24 = vmul.f32 1.442695, %v842_v17 }
 0x329   :  { %v7401_v8 = vpop.eup %6785  ;;  %v828_v57 = vpop.xlane.xlu1 %827 }
 0x32a   :  { %v883_v27 = vsel %vm801_vm3, %v7401_v8, 0.0  ;;  %v7405_v28 = vpop.eup %6787  ;;  %6795 = vpow2.f32 %v858_v24  ;;  %v831_v58 = vpop.xlane.xlu0 %830  ;;  %v846_v59 = vsub.f32 %v7369_v16, %v828_v57 }
 0x32b   :  { %884 = vadd.xlane.f32.xlu1 %v883_v27  ;;  %v880_v11 = vsel %vm801_vm3, %v7405_v28, 0.0  ;;  %v847_v61 = vsub.f32 %v7367_v14, %v831_v58  ;;  %v6313_v27 = vpack.c.bf16 %v6586_v4, %v6585_v13 }
 0x32c   :  { %v7407_v34 = vpop.eup %6789  ;;  %v866_v63 = vmul.f32 1.442695, %v846_v59 }
 0x32d   :  { %v7411_v37 = vpop.eup %6791  ;;  %v907_v41 = vsel %vm801_vm3, %v7407_v34, 0.0  ;;  %v868_v0 = vmul.f32 1.442695, %v847_v61  ;;  %v6604_v16 = vpop.permute.xlu1 %6603 }
 0x32e   :  { %908 = vadd.xlane.f32.xlu0 %v907_v41  ;;  %v904_v50 = vsel %vm801_vm3, %v7411_v37, 0.0  ;;  %6797 = vpow2.f32 %v866_v63  ;;  %v7455_v14 = vpop.permute.xlu0 %6598  ;;  %v6606_v63 = vunpack.i.h.bf16 %v6604_v16 }
 0x32f   :  { %881 = vadd.xlane.f32.xlu1 %v880_v11  ;;  %6799 = vpow2.f32 %v868_v0  ;;  %v6605_v0 = vunpack.i.l.bf16 %v6604_v16 }
 0x330   :  { %v7415_v46 = vpop.eup %6793 }
 0x331   :  { %v889_v51 = vsel %vm801_vm3, %v7415_v46, 0.0 }
 0x332   :  { %890 = vadd.xlane.f32.xlu0 %v889_v51 }
 0x333   :  { %905 = vadd.xlane.f32.xlu1 %v904_v50 }
 0x334   :  { %v7421_v52 = vpop.eup %6795 }
 0x335   :  { %v886_v55 = vsel %vm801_vm3, %v7421_v52, 0.0 }
 0x336   :  { %887 = vadd.xlane.f32.xlu0 %v886_v55  ;;  %v6595_v55 = vunpack.i.l.bf16 %v7381_v20 }
 0x338   :  { %v7432_v43 = vpop.eup %6797 }
 0x339   :  { %v7434_v1 = vpop.eup %6799  ;;  %v898_v49 = vsel %vm801_vm3, %v7432_v43, 0.0 }
 0x33a   :  { %v901_v3 = vsel %vm801_vm3, %v7434_v1, 0.0 }
 0x344   :  { %1471 = vrot.lane.b32.xlu1 %v7235_v25, %s7096_s25 }
 0x348   :  { %6613 = vrot.lane.b32.xlu1 %v7261_v38, %s7095_s23 }
 0x34c   :  { %6608 = vrot.lane.b32.xlu0 %v7243_v29, %s7095_s23 }
 0x36b   :  { %902 = vadd.xlane.f32.xlu0 %v901_v3 }
 0x36c   :  { %899 = vadd.xlane.f32.xlu1 %v898_v49 }
 0x37d   :  { %1564 = vrot.lane.b32.xlu1 %v7251_v32, %s7096_s25 }
 0x381   :  { %6618 = vrot.lane.b32.xlu1 %v7277_v44, %s7095_s23  ;;  %1473 = vrot.lane.b32.xlu0 %v7231_v21, %s7096_s25 }
 0x385   :  { %1744 = vrot.lane.b32.xlu1 %v7253_v35, %s7096_s25  ;;  %1562 = vrot.lane.b32.xlu0 %v7256_v36, %s7096_s25 }
 0x389   :  { %1746 = vrot.lane.b32.xlu1 %v7249_v31, %s7096_s25  ;;  %1653 = vrot.lane.b32.xlu0 %v7237_v26, %s7096_s25 }
 0x38d   :  { %1837 = vrot.lane.b32.xlu1 %v7269_v40, %s7096_s25  ;;  %1655 = vrot.lane.b32.xlu0 %v7233_v22, %s7096_s25 }
 0x391   :  { %1928 = vrot.lane.b32.xlu1 %v7279_v45, %s7096_s25  ;;  %6623 = vrot.lane.b32.xlu0 %v7286_v48, %s7095_s23 }
 0x395   :  { %1835 = vrot.lane.b32.xlu0 %v7271_v42, %s7096_s25 }
 0x399   :  { %1926 = vrot.lane.b32.xlu0 %v7281_v47, %s7096_s25 }
 0x3ae   :  { %v879_v5 = vpop.xlane.xlu0 %878 }
 0x3af   :  { %6801 = vrcp.f32 %v879_v5  ;;  %v876_v54 = vpop.xlane.xlu1 %875  ;;  %v6331_v5 = vpack.c.bf16 %v6606_v63, %v6605_v0 }
 0x3b0   :  { %6803 = vrcp.f32 %v876_v54  ;;  %v6601_v54 = vunpack.i.h.bf16 %v7455_v14 }
 0x3b4   :  { %v894_v56 = vpop.xlane.xlu1 %893 }
 0x3b5   :  { %v897_v62 = vpop.xlane.xlu0 %896  ;;  %6805 = vrcp.f32 %v894_v56  ;;  %v6600_v56 = vunpack.i.l.bf16 %v7455_v14 }
 0x3b7   :  { %v6325_v4 = vpack.c.bf16 %v6601_v54, %v6600_v56 }
 0x3b8   :  { %v885_v9 = vpop.xlane.xlu1 %884 }
 0x3b9   :  { %v6802_v60 = vpop.eup %6801  ;;  %6807 = vrcp.f32 %v885_v9 }
 0x3ba   :  { %v6804_v10 = vpop.eup %6803  ;;  %v923_v18 = vmul.f32 %v6802_v60, %v7383_v6  ;;  %v6596_v6 = vunpack.i.h.bf16 %v7381_v20 }
 0x3bb   :  { %v922_v17 = vmul.f32 %v6804_v10, %v7385_v7  ;;  %v909_v24 = vpop.xlane.xlu0 %908 }
 0x3bc   :  { %v882_v15 = vpop.xlane.xlu1 %881  ;;  %v6321_v3 = vpack.c.bf16 %v6596_v6, %v6595_v55 }
 0x3bd   :  { %6809 = vrcp.f32 %v882_v15  ;;  %5941 = vmatprep.mubr.msk.f32.mxu1 %vm801_vm3, %v922_v17 }
 0x3be   :  { %5942 = vmatmul.mubr.msk.f32.vlgmr.msra.gmra.mrb[16].mxu1 %vm801_vm3, %v923_v18  ;;  %6811 = vrcp.f32 %v897_v62 }
 0x3bf   :  { %6308 = vmatpush3.bf16.msra.mxu1 %v7348_v33  ;;  %v891_v19 = vpop.xlane.xlu0 %890  ;;  %v6806_v41 = vpop.eup %6805 }
 0x3c0   :  { %v906_v11 = vpop.xlane.xlu1 %905  ;;  %6314 = vmatprep.subr.bf16.mxu1 %v6313_v27  ;;  %v928_v59 = vmul.f32 %v6806_v41, %v7392_v2 }
 0x3c1   :  { %6813 = vrcp.f32 %v906_v11 }
 0x3c2   :  { %6815 = vrcp.f32 %v909_v24 }
 0x3c3   :  { %v6808_v50 = vpop.eup %6807  ;;  %6817 = vrcp.f32 %v891_v19  ;;  %v888_v7 = vpop.xlane.xlu0 %887 }
 0x3c4   :  { %6819 = vrcp.f32 %v888_v7  ;;  %v925_v58 = vmul.f32 %v6808_v50, %v7401_v8  ;;  %v1472_v49 = vpop.permute.xlu1 %1471 }
 0x3c7   :  { %v6810_v51 = vpop.eup %6809 }
 0x3c8   :  { %v924_v57 = vmul.f32 %v6810_v51, %v7405_v28  ;;  %v6812_v33 = vpop.eup %6811  ;;  %v6614_v9 = vpop.permute.xlu1 %6613 }
 0x3c9   :  { %v929_v20 = vmul.f32 %v6812_v33, %v7394_v12  ;;  %v6616_v62 = vunpack.i.h.bf16 %v6614_v9  ;;  %v6615_v10 = vunpack.i.l.bf16 %v6614_v9 }
 0x3ca   :  { %5948 = vmatprep.mubr.msk.f32.mxu1 %vm801_vm3, %v924_v57 }
 0x3cb   :  { %v6814_v61 = vpop.eup %6813  ;;  %5949 = vmatmul.mubr.msk.f32.vlgmr.msra.gmra.mrb[18].mxu1 %vm801_vm3, %v925_v58  ;;  %v6343_v14 = vpack.c.bf16 %v6616_v62, %v6615_v10 }
 0x3cc   :  { %6316 = vmatpush3.bf16.msra.mxu1 %v6313_v27  ;;  %5962 = vmatprep.mubr.msk.f32.mxu1 %vm801_vm3, %v928_v59  ;;  %v6816_v28 = vpop.eup %6815  ;;  %v932_v8 = vmul.f32 %v6814_v61, %v7411_v37 }
 0x3cd   :  { %6322 = vmatprep.subr.bf16.mxu1 %v6321_v3  ;;  %v6818_v2 = vpop.eup %6817  ;;  %v933_v12 = vmul.f32 %v6816_v28, %v7407_v34  ;;  %v6609_v34 = vpop.permute.xlu0 %6608 }
 0x3ce   :  { %v6820_v16 = vpop.eup %6819  ;;  %v927_v60 = vmul.f32 %v6818_v2, %v7415_v46  ;;  %v6611_v24 = vunpack.i.h.bf16 %v6609_v34  ;;  %v6610_v27 = vunpack.i.l.bf16 %v6609_v34 }
 0x3cf   :  { %5963 = vmatmul.mubr.msk.f32.vlgmr.msra.gmra.mrb[20].mxu1 %vm801_vm3, %v929_v20  ;;  %v926_v37 = vmul.f32 %v6820_v16, %v7421_v52 }
 0x3d0   :  { %6324 = vmatpush3.bf16.msra.mxu1 %v6321_v3  ;;  %5976 = vmatprep.mubr.msk.f32.mxu1 %vm801_vm3, %v932_v8  ;;  %v6337_v51 = vpack.c.bf16 %v6611_v24, %v6610_v27 }
 0x3d1   :  { %6333 = vmatprep.subr.msk.bf16.mxu1 %vm7297_vm2, %v6331_v5  ;;  %5955 = vmatprep.mubr.msk.f32.mxu0 %vm801_vm3, %v926_v37  ;;  %v1470_v37 = vld [vmem:[#allocation8 + $0x18] sm:$0xff] }
 0x3d2   :  { %5956 = vmatmul.mubr.msk.f32.vlgmr.msra.gmra.mrb[8].mxu0 %vm801_vm3, %v927_v60  ;;  %v1469_v60 = vld [vmem:[#allocation8 + $0x10] sm:$0xff] }
 0x3d3   :  { %5977 = vmatmul.mubr.msk.f32.vlgmr.msra.gmra.mrb[22].mxu1 %vm801_vm3, %v933_v12  ;;  %6320 = vmatpush3.bf16.msra.mxu0 %v7337_v23 }
 0x3d4   :  { %6327 = vmatprep.subr.msk.bf16.mxu0 %vm7297_vm2, %v6325_v4 }
 0x3d9   :  { %6336 = vmatpush3.bf16.xpose.msk.msra.mxu1 %vm7297_vm2, %v6331_v5 }
 0x3da   :  { %6345 = vmatprep.subr.msk.bf16.mxu1 %vm7297_vm2, %v6343_v14 }
 0x3f8   :  { %v903_v52 = vpop.xlane.xlu0 %902 }
 0x3f9   :  { %v900_v46 = vpop.xlane.xlu1 %899 }
 0x3fa   :  { %6821 = vrcp.f32 %v900_v46 }
 0x3fb   :  { %6823 = vrcp.f32 %v903_v52 }
 0x3fc   :  { %v1474_v15 = vpop.permute.xlu0 %1473 }
 0x3fd   :  { %v1565_v13 = vpop.permute.xlu1 %1564 }
 0x400   :  { %v1563_v18 = vpop.permute.xlu0 %1562 }
 0x401   :  { %v6619_v17 = vpop.permute.xlu1 %6618  ;;  %5990 = vmatprep.mubr.msk.f32.mxu1 %vm272_vm1, %v1563_v18 }
 0x402   :  { %5991 = vmatmul.mubr.msk.f32.vlgmr.msra.gmra.mrb[24].mxu1 %vm272_vm1, %v1565_v13  ;;  %v6621_v55 = vunpack.i.h.bf16 %v6619_v17  ;;  %v6620_v57 = vunpack.i.l.bf16 %v6619_v17 }
 0x403   :  { %6348 = vmatpush3.bf16.xpose.msk.msra.mxu1 %vm7297_vm2, %v6343_v14 }
 0x404   :  { %v6822_v23 = vpop.eup %6821  ;;  %v1654_v50 = vpop.permute.xlu0 %1653  ;;  %v6349_v59 = vpack.c.bf16 %v6621_v55, %v6620_v57 }
 0x405   :  { %v1745_v11 = vpop.permute.xlu1 %1744  ;;  %v930_v19 = vmul.f32 %v6822_v23, %v7432_v43  ;;  %v6824_v41 = vpop.eup %6823 }
 0x406   :  { %6004 = vmatprep.mubr.msk.f32.mxu1 %vm272_vm1, %v1745_v11  ;;  %v931_v7 = vmul.f32 %v6824_v41, %v7434_v1 }
 0x407   :  { %5969 = vmatprep.mubr.msk.f32.mxu0 %vm801_vm3, %v930_v19 }
 0x408   :  { %5970 = vmatmul.mubr.msk.f32.vlgmr.msra.gmra.mrb[10].mxu0 %vm801_vm3, %v931_v7  ;;  %v1656_v43 = vpop.permute.xlu0 %1655 }
 0x409   :  { %6330 = vmatpush3.bf16.xpose.msk.msra.mxu0 %vm7297_vm2, %v6325_v4  ;;  %v1747_v6 = vpop.permute.xlu1 %1746  ;;  %5983 = vmatprep.mubr.msk.f32.mxu0 %vm272_vm1, %v1472_v49 }
 0x40a   :  { %6339 = vmatprep.subr.msk.bf16.mxu0 %vm7297_vm2, %v6337_v51  ;;  %6005 = vmatmul.mubr.msk.f32.vlgmr.msra.gmra.mrb[26].mxu1 %vm272_vm1, %v1747_v6 }
 0x40c   :  { %v6624_v58 = vpop.permute.xlu0 %6623 }
 0x40d   :  { %v6626_v33 = vunpack.i.h.bf16 %v6624_v58  ;;  %v6625_v1 = vunpack.i.l.bf16 %v6624_v58  ;;  %v1838_v0 = vpop.permute.xlu1 %1837 }
 0x40f   :  { %v6355_v61 = vpack.c.bf16 %v6626_v33, %v6625_v1 }
 0x410   :  { %5984 = vmatmul.mubr.msk.f32.vlgmr.msra.gmra.mrb[12].mxu0 %vm272_vm1, %v1474_v15  ;;  %v1836_v63 = vpop.permute.xlu0 %1835 }
 0x411   :  { %6342 = vmatpush3.bf16.xpose.msk.msra.mxu0 %vm7297_vm2, %v6337_v51  ;;  %5997 = vmatprep.mubr.msk.f32.mxu0 %vm272_vm1, %v1654_v50  ;;  %v1929_v3 = vpop.permute.xlu1 %1928 }
 0x412   :  { %6351 = vmatprep.subr.msk.bf16.mxu0 %vm7297_vm2, %v6349_v59  ;;  %6357 = vmatprep.subr.msk.bf16.mxu1 %vm7297_vm2, %v6355_v61 }
 0x413   :  { %6360 = vmatpush3.bf16.xpose.msk.msra.mxu1 %vm7297_vm2, %v6355_v61 }
 0x414   :  { %v1927_v49 = vpop.permute.xlu0 %1926 }
 0x415   :  { %6018 = vmatprep.mubr.msk.f32.mxu1 %vm272_vm1, %v1927_v49 }
 0x418   :  { %5998 = vmatmul.mubr.msk.f32.vlgmr.msra.gmra.mrb[14].mxu0 %vm272_vm1, %v1656_v43 }
 0x419   :  { %6354 = vmatpush3.bf16.xpose.msk.msra.mxu0 %vm7297_vm2, %v6349_v59  ;;  %6011 = vmatprep.mubr.msk.f32.mxu0 %vm272_vm1, %v1836_v63 }
 0x41a   :  { %6019 = vmatmul.mubr.msk.f32.vlgmr.msra.gmra.mrb[28].mxu1 %vm272_vm1, %v1929_v3 }
 0x420   :  { %6012 = vmatmul.mubr.msk.f32.vlgmr.msra.gmra.mrb[16].mxu0 %vm272_vm1, %v1838_v0 }
 0x491   :  { %v5943_v20 = vpop.f32.mrb[16].mxu1 }
 0x492   :  { %1457 = vst.msk [vmem:[#allocation2 + $0x8] sm:$0xff] %vm272_vm1, %v5943_v20  ;;  %v1012_v28 = vpop.f32.mrb[17].mxu1 }
 0x493   :  { %1456 = vst.msk [vmem:[#allocation2] sm:$0xff] %vm272_vm1, %v1012_v28 }
 0x49e   :  { %v5950_v8 = vpop.f32.mrb[18].mxu1 }
 0x49f   :  { %1459 = vst.msk [vmem:[#allocation2 + $0x18] sm:$0xff] %vm272_vm1, %v5950_v8  ;;  %v1099_v5 = vpop.f32.mrb[19].mxu1 }
 0x4a0   :  { %1458 = vst.msk [vmem:[#allocation2 + $0x10] sm:$0xff] %vm272_vm1, %v1099_v5 }
 0x4a2   :  { %v5964_v2 = vpop.f32.mrb[20].mxu1 }
 0x4a3   :  { %1463 = vst.msk [vmem:[#allocation2 + $0x38] sm:$0xff] %vm272_vm1, %v5964_v2  ;;  %v1273_v16 = vpop.f32.mrb[21].mxu1 }
 0x4a4   :  { %1462 = vst.msk [vmem:[#allocation2 + $0x30] sm:$0xff] %vm272_vm1, %v1273_v16 }
 0x4a5   :  { %v5957_v9 = vpop.f32.mrb[8].mxu0 }
 0x4a6   :  { %v5978_v54 = vpop.f32.mrb[22].mxu1  ;;  %1461 = vst.msk [vmem:[#allocation2 + $0x28] sm:$0xff] %vm272_vm1, %v5957_v9  ;;  %v1186_v12 = vpop.f32.mrb[9].mxu0 }
 0x4a7   :  { %1467 = vst.msk [vmem:[#allocation2 + $0x58] sm:$0xff] %vm272_vm1, %v5978_v54  ;;  %v1447_v56 = vpop.f32.mrb[23].mxu1  ;;  %1460 = vst.msk [vmem:[#allocation2 + $0x20] sm:$0xff] %vm272_vm1, %v1186_v12 }
 0x4a8   :  { %1466 = vst.msk [vmem:[#allocation2 + $0x50] sm:$0xff] %vm272_vm1, %v1447_v56 }
 0x4d5   :  { %v5992_v62 = vpop.f32.mrb[24].mxu1 }
 0x4d6   :  { %v7535_v10 = vadd.f32 %v5992_v62, %v1470_v37  ;;  %v1644_v4 = vpop.f32.mrb[25].mxu1 }
 0x4d7   :  { %v7537_v14 = vadd.f32 %v1644_v4, %v1469_v60 }
 0x4d8   :  { %v2026_v34 = vsel %vm801_vm3, %v7535_v10, -inf }
 0x4d9   :  { %2027 = vmax.xlane.f32.xlu1 %v2026_v34  ;;  %v2023_v52 = vsel %vm801_vm3, %v7537_v14, -inf }
 0x4da   :  { %2024 = vmax.xlane.f32.xlu0 %v2023_v52 }
 0x4db   :  { %v5971_v46 = vpop.f32.mrb[10].mxu0 }
 0x4dc   :  { %1465 = vst.msk [vmem:[#allocation2 + $0x48] sm:$0xff] %vm272_vm1, %v5971_v46  ;;  %v1360_v13 = vpop.f32.mrb[11].mxu0 }
 0x4dd   :  { %1464 = vst.msk [vmem:[#allocation2 + $0x40] sm:$0xff] %vm272_vm1, %v1360_v13  ;;  %v6006_v15 = vpop.f32.mrb[26].mxu1 }
 0x4de   :  { %v1826_v17 = vpop.f32.mrb[27].mxu1  ;;  %v7562_v1 = vadd.f32 %v6006_v15, %v1470_v37 }
 0x4df   :  { %v7547_v11 = vadd.f32 %v1826_v17, %v1469_v60 }
 0x4e0   :  { %v2038_v20 = vsel %vm801_vm3, %v7562_v1, -inf }
 0x4e1   :  { %v2035_v50 = vsel %vm801_vm3, %v7547_v11, -inf }
 0x4e3   :  { %v5985_v18 = vpop.f32.mrb[12].mxu0 }
 0x4e4   :  { %v7545_v23 = vadd.f32 %v5985_v18, %v1470_v37  ;;  %v1553_v24 = vpop.f32.mrb[13].mxu0 }
 0x4e5   :  { %v1554_v27 = vadd.f32 %v1553_v24, %v1469_v60 }
 0x4e6   :  { %v2020_v19 = vsel %vm801_vm3, %v7545_v23, -inf }
 0x4e7   :  { %2021 = vmax.xlane.f32.xlu1 %v2020_v19  ;;  %v2017_v41 = vsel %vm801_vm3, %v1554_v27, -inf }
 0x4e8   :  { %2018 = vmax.xlane.f32.xlu0 %v2017_v41 }
 0x4eb   :  { %2036 = vmax.xlane.f32.xlu1 %v2035_v50  ;;  %v5999_v7 = vpop.f32.mrb[14].mxu0 }
 0x4ec   :  { %v7554_v51 = vadd.f32 %v5999_v7, %v1470_v37  ;;  %v1735_v6 = vpop.f32.mrb[15].mxu0 }
 0x4ed   :  { %v7556_v43 = vadd.f32 %v1735_v6, %v1469_v60  ;;  %v6020_v55 = vpop.f32.mrb[28].mxu1 }
 0x4ee   :  { %v2032_v57 = vsel %vm801_vm3, %v7554_v51, -inf  ;;  %v2008_v58 = vpop.f32.mrb[29].mxu1  ;;  %v7574_v28 = vadd.f32 %v6020_v55, %v1470_v37 }
 0x4ef   :  { %2033 = vmax.xlane.f32.xlu0 %v2032_v57  ;;  %v7560_v33 = vadd.f32 %v2008_v58, %v1469_v60  ;;  %v2029_v61 = vsel %vm801_vm3, %v7556_v43, -inf }
 0x4f0   :  { %v2050_v5 = vsel %vm801_vm3, %v7574_v28, -inf }
 0x4f1   :  { %v2047_v59 = vsel %vm801_vm3, %v7560_v33, -inf }
 0x4f2   :  { %2048 = vmax.xlane.f32.xlu1 %v2047_v59 }
 0x4f3   :  { %v6013_v63 = vpop.f32.mrb[16].mxu0  ;;  %2030 = vmax.xlane.f32.xlu0 %v2029_v61 }
 0x4f4   :  { %v1917_v0 = vpop.f32.mrb[17].mxu0  ;;  %v7570_v3 = vadd.f32 %v6013_v63, %v1470_v37 }
 0x4f5   :  { %v7568_v49 = vadd.f32 %v1917_v0, %v1469_v60 }
 0x4f6   :  { %v2044_v8 = vsel %vm801_vm3, %v7570_v3, -inf }
 0x4f7   :  { %2039 = vmax.xlane.f32.xlu0 %v2038_v20  ;;  %v2041_v2 = vsel %vm801_vm3, %v7568_v49, -inf }
 0x4fb   :  { %2045 = vmax.xlane.f32.xlu0 %v2044_v8 }
 0x4ff   :  { %2051 = vmax.xlane.f32.xlu0 %v2050_v5 }
 0x503   :  { %6628 = vrot.lane.b32.xlu1 %v7247_v30, %s7097_s26 }
 0x507   :  { %6638 = vrot.lane.b32.xlu1 %v7243_v29, %s7097_s26 }
 0x50b   :  { %6643 = vrot.lane.b32.xlu1 %v7261_v38, %s7097_s26 }
 0x50f   :  { %6653 = vrot.lane.b32.xlu1 %v7286_v48, %s7097_s26 }
 0x513   :  { %6663 = vrot.lane.b32.xlu1 %v7265_v39, %s7098_s27 }
 0x515   :  { %6633 = vrot.lane.b32.xlu0 %v7265_v39, %s7097_s26 }
 0x519   :  { %6648 = vrot.lane.b32.xlu0 %v7277_v44, %s7097_s26 }
 0x51d   :  { %6658 = vrot.lane.b32.xlu0 %v7247_v30, %s7098_s27 }
 0x521   :  { %6668 = vrot.lane.b32.xlu0 %v7243_v29, %s7098_s27 }
 0x537   :  { %2042 = vmax.xlane.f32.xlu1 %v2041_v2 }
 0x548   :  { %2735 = vrot.lane.b32.xlu1 %v7235_v25, %s7099_s28 }
 0x566   :  { %v2028_v16 = vpop.xlane.xlu1 %2027 }
 0x567   :  { %v2056_v54 = vsub.f32 %v7535_v10, %v2028_v16  ;;  %v2025_v56 = vpop.xlane.xlu0 %2024 }
 0x568   :  { %v2055_v9 = vsub.f32 %v7537_v14, %v2025_v56 }
 0x569   :  { %v2071_v12 = vmul.f32 1.442695, %v2056_v54 }
 0x56a   :  { %v2069_v37 = vmul.f32 1.442695, %v2055_v9 }
 0x56b   :  { %6825 = vpow2.f32 %v2071_v12 }
 0x56c   :  { %6827 = vpow2.f32 %v2069_v37 }
 0x574   :  { %v2022_v60 = vpop.xlane.xlu1 %2021 }
 0x575   :  { %v2054_v62 = vsub.f32 %v7545_v23, %v2022_v60  ;;  %v2019_v4 = vpop.xlane.xlu0 %2018  ;;  %v7599_v46 = vpop.eup %6825 }
 0x576   :  { %v2053_v34 = vsub.f32 %v1554_v27, %v2019_v4  ;;  %v2098_v10 = vsel %vm801_vm3, %v7599_v46, 0.0  ;;  %v7603_v17 = vpop.eup %6827 }
 0x577   :  { %v2067_v52 = vmul.f32 1.442695, %v2054_v62  ;;  %2099 = vadd.xlane.f32.xlu1 %v2098_v10  ;;  %v2095_v23 = vsel %vm801_vm3, %v7603_v17, 0.0 }
 0x578   :  { %v2065_v13 = vmul.f32 1.442695, %v2053_v34  ;;  %v2037_v15 = vpop.xlane.xlu1 %2036 }
 0x579   :  { %6829 = vpow2.f32 %v2067_v52  ;;  %v2059_v14 = vsub.f32 %v7547_v11, %v2037_v15 }
 0x57a   :  { %6831 = vpow2.f32 %v2065_v13 }
 0x57b   :  { %v2077_v18 = vmul.f32 1.442695, %v2059_v14  ;;  %2096 = vadd.xlane.f32.xlu1 %v2095_v23 }
 0x57c   :  { %v2034_v24 = vpop.xlane.xlu0 %2033 }
 0x57d   :  { %6833 = vpow2.f32 %v2077_v18  ;;  %v2058_v7 = vsub.f32 %v7554_v51, %v2034_v24 }
 0x57f   :  { %v2049_v27 = vpop.xlane.xlu1 %2048  ;;  %v2075_v51 = vmul.f32 1.442695, %v2058_v7 }
 0x580   :  { %v2031_v19 = vpop.xlane.xlu0 %2030  ;;  %v2063_v41 = vsub.f32 %v7560_v33, %v2049_v27 }
 0x581   :  { %v2057_v20 = vsub.f32 %v7556_v43, %v2031_v19 }
 0x582   :  { %v2085_v6 = vmul.f32 1.442695, %v2063_v41 }
 0x583   :  { %v7609_v50 = vpop.eup %6829  ;;  %v6629_v11 = vpop.permute.xlu1 %6628  ;;  %v2073_v9 = vmul.f32 1.442695, %v2057_v20 }
 0x584   :  { %v7612_v55 = vpop.eup %6831  ;;  %v2040_v57 = vpop.xlane.xlu0 %2039  ;;  %v2092_v58 = vsel %vm801_vm3, %v7609_v50, 0.0  ;;  %6835 = vpow2.f32 %v2085_v6  ;;  %v6631_v59 = vunpack.i.h.bf16 %v6629_v11  ;;  %v6630_v61 = vunpack.i.l.bf16 %v6629_v11 }
 0x585   :  { %v2060_v63 = vsub.f32 %v7562_v1, %v2040_v57  ;;  %2093 = vadd.xlane.f32.xlu0 %v2092_v58  ;;  %v2089_v33 = vsel %vm801_vm3, %v7612_v55, 0.0 }
 0x586   :  { %2090 = vadd.xlane.f32.xlu1 %v2089_v33  ;;  %v6361_v5 = vpack.c.bf16 %v6631_v59, %v6630_v61 }
 0x587   :  { %v7619_v0 = vpop.eup %6833  ;;  %v2079_v8 = vmul.f32 1.442695, %v2060_v63  ;;  %v6639_v2 = vpop.permute.xlu1 %6638 }
 0x588   :  { %v2046_v16 = vpop.xlane.xlu0 %2045  ;;  %v2107_v54 = vsel %vm801_vm3, %v7619_v0, 0.0  ;;  %v6641_v56 = vunpack.i.h.bf16 %v6639_v2  ;;  %v6640_v1 = vunpack.i.l.bf16 %v6639_v2  ;;  %6362 = vmatprep.subr.bf16.mxu0 %v6361_v5 }
 0x589   :  { %6837 = vpow2.f32 %v2079_v8  ;;  %6364 = vmatpush3.bf16.msra.mxu0 %v6361_v5  ;;  %v2062_v62 = vsub.f32 %v7570_v3, %v2046_v16 }
 0x58a   :  { %6839 = vpow2.f32 %v2075_v51  ;;  %2108 = vadd.xlane.f32.xlu1 %v2107_v54  ;;  %v7624_v12 = vpack.c.bf16 %v6641_v56, %v6640_v1 }
 0x58b   :  { %6841 = vpow2.f32 %v2073_v9  ;;  %v6644_v4 = vpop.permute.xlu1 %6643 }
 0x58c   :  { %v2052_v37 = vpop.xlane.xlu0 %2051  ;;  %6370 = vmatprep.subr.bf16.mxu0 %v7624_v12  ;;  %v6646_v10 = vunpack.i.h.bf16 %v6644_v4  ;;  %v6645_v14 = vunpack.i.l.bf16 %v6644_v4 }
 0x58d   :  { %v2064_v43 = vsub.f32 %v7574_v28, %v2052_v37  ;;  %v2083_v28 = vmul.f32 1.442695, %v2062_v62 }
 0x58e   :  { %v7628_v60 = vpop.eup %6835  ;;  %v6373_v19 = vpack.c.bf16 %v6646_v10, %v6645_v14 }
 0x58f   :  { %v2087_v34 = vmul.f32 1.442695, %v2064_v43  ;;  %v2119_v13 = vsel %vm801_vm3, %v7628_v60, 0.0  ;;  %v6654_v61 = vpop.permute.xlu1 %6653 }
 0x590   :  { %v6634_v52 = vpop.permute.xlu0 %6633  ;;  %2120 = vadd.xlane.f32.xlu1 %v2119_v13  ;;  %v6656_v4 = vunpack.i.h.bf16 %v6654_v61 }
 0x591   :  { %v6636_v15 = vunpack.i.h.bf16 %v6634_v52  ;;  %v6635_v18 = vunpack.i.l.bf16 %v6634_v52  ;;  %6843 = vpow2.f32 %v2087_v34  ;;  %v6655_v34 = vunpack.i.l.bf16 %v6654_v61 }
 0x592   :  { %6845 = vpow2.f32 %v2083_v28 }
 0x593   :  { %v7633_v24 = vpop.eup %6837  ;;  %v6365_v27 = vpack.c.bf16 %v6636_v15, %v6635_v18  ;;  %v7659_v63 = vpop.permute.xlu1 %6663  ;;  %v6381_v10 = vpack.c.bf16 %v6656_v4, %v6655_v34 }
 0x594   :  { %v2110_v23 = vsel %vm801_vm3, %v7633_v24, 0.0  ;;  %v7637_v3 = vpop.eup %6839  ;;  %v6666_v61 = vunpack.i.h.bf16 %v7659_v63 }
 0x595   :  { %2111 = vadd.xlane.f32.xlu0 %v2110_v23  ;;  %6366 = vmatprep.subr.bf16.mxu1 %v6365_v27  ;;  %v2104_v41 = vsel %vm801_vm3, %v7637_v3, 0.0  ;;  %v7641_v7 = vpop.eup %6841 }
 0x596   :  { %6368 = vmatpush3.bf16.msra.mxu1 %v6365_v27  ;;  %v2101_v6 = vsel %vm801_vm3, %v7641_v7, 0.0 }
 0x597   :  { %6374 = vmatprep.subr.bf16.mxu1 %v6373_v19 }
 0x599   :  { %2105 = vadd.xlane.f32.xlu0 %v2104_v41 }
 0x59b   :  { %v7645_v11 = vpop.eup %6843 }
 0x59c   :  { %v2122_v57 = vsel %vm801_vm3, %v7645_v11, 0.0  ;;  %v7649_v58 = vpop.eup %6845 }
 0x59d   :  { %2102 = vadd.xlane.f32.xlu0 %v2101_v6  ;;  %v2116_v59 = vsel %vm801_vm3, %v7649_v58, 0.0 }
 0x5a1   :  { %2123 = vadd.xlane.f32.xlu0 %v2122_v57  ;;  %6673 = vrot.lane.b32.xlu1 %v7261_v38, %s7098_s27 }
 0x5a5   :  { %2117 = vadd.xlane.f32.xlu0 %v2116_v59 }
 0x5bb   :  { %2737 = vrot.lane.b32.xlu0 %v7231_v21, %s7099_s28 }
 0x5bf   :  { %2826 = vrot.lane.b32.xlu0 %v7256_v36, %s7099_s28 }
 0x5c3   :  { %2917 = vrot.lane.b32.xlu0 %v7237_v26, %s7099_s28 }
 0x5c4   :  { %v2043_v33 = vpop.xlane.xlu1 %2042 }
 0x5c5   :  { %v2061_v51 = vsub.f32 %v7568_v49, %v2043_v33  ;;  %v6649_v49 = vpop.permute.xlu0 %6648  ;;  %v6665_v33 = vunpack.i.l.bf16 %v7659_v63 }
 0x5c6   :  { %v6651_v28 = vunpack.i.h.bf16 %v6649_v49  ;;  %v6650_v23 = vunpack.i.l.bf16 %v6649_v49 }
 0x5c7   :  { %2919 = vrot.lane.b32.xlu0 %v7233_v22, %s7099_s28  ;;  %v2081_v20 = vmul.f32 1.442695, %v2061_v51 }
 0x5c8   :  { %v7688_v2 = vpop.permute.xlu1 %2735  ;;  %v6377_v57 = vpack.c.bf16 %v6651_v28, %v6650_v23 }
 0x5c9   :  { %6847 = vpow2.f32 %v2081_v20  ;;  %v7690_v54 = vpop.permute.xlu0 %6658 }
 0x5ca   :  { %v6661_v63 = vunpack.i.h.bf16 %v7690_v54 }
 0x5cb   :  { %6683 = vrot.lane.b32.xlu0 %v7286_v48, %s7098_s27 }
 0x5cd   :  { %v7692_v1 = vpop.permute.xlu0 %6668 }
 0x5cf   :  { %3099 = vrot.lane.b32.xlu0 %v7271_v42, %s7099_s28 }
 0x5d3   :  { %3190 = vrot.lane.b32.xlu0 %v7281_v47, %s7099_s28  ;;  %v7672_v8 = vpop.eup %6847 }
 0x5d4   :  { %v2113_v5 = vsel %vm801_vm3, %v7672_v8, 0.0 }
 0x5d5   :  { %2114 = vadd.xlane.f32.xlu1 %v2113_v5 }
 0x5e6   :  { %2828 = vrot.lane.b32.xlu1 %v7251_v32, %s7099_s28 }
 0x5ea   :  { %6678 = vrot.lane.b32.xlu1 %v7277_v44, %s7098_s27 }
 0x5ee   :  { %3008 = vrot.lane.b32.xlu1 %v7253_v35, %s7099_s28 }
 0x5f2   :  { %3010 = vrot.lane.b32.xlu1 %v7249_v31, %s7099_s28 }
 0x5f6   :  { %3101 = vrot.lane.b32.xlu1 %v7269_v40, %s7099_s28 }
 0x5fa   :  { %3192 = vrot.lane.b32.xlu1 %v7279_v45, %s7099_s28 }
 0x604   :  { %v2100_v16 = vpop.xlane.xlu1 %2099 }
 0x605   :  { %6849 = vrcp.f32 %v2100_v16 }
 0x608   :  { %v2097_v56 = vpop.xlane.xlu1 %2096 }
 0x609   :  { %6851 = vrcp.f32 %v2097_v56 }
 0x60f   :  { %v6850_v37 = vpop.eup %6849 }
 0x610   :  { %v2140_v13 = vmul.f32 %v6850_v37, %v7599_v46 }
 0x612   :  { %v2094_v9 = vpop.xlane.xlu0 %2093 }
 0x613   :  { %6853 = vrcp.f32 %v2094_v9  ;;  %v2091_v43 = vpop.xlane.xlu1 %2090  ;;  %v6852_v62 = vpop.eup %6851  ;;  %v6660_v9 = vunpack.i.l.bf16 %v7690_v54 }
 0x614   :  { %6855 = vrcp.f32 %v2091_v43  ;;  %v2139_v52 = vmul.f32 %v6852_v62, %v7603_v17 }
 0x616   :  { %6032 = vmatprep.mubr.msk.f32.mxu1 %vm801_vm3, %v2139_v52  ;;  %v6385_v52 = vpack.c.bf16 %v6661_v63, %v6660_v9 }
 0x617   :  { %v2109_v15 = vpop.xlane.xlu1 %2108  ;;  %6033 = vmatmul.mubr.msk.f32.vlgmr.msra.gmra.mrb[30].mxu1 %vm801_vm3, %v2140_v13 }
 0x618   :  { %6857 = vrcp.f32 %v2109_v15  ;;  %6376 = vmatpush3.bf16.msra.mxu1 %v6373_v19 }
 0x619   :  { %6382 = vmatprep.subr.bf16.mxu1 %v6381_v10 }
 0x61d   :  { %v6854_v14 = vpop.eup %6853  ;;  %v2121_v27 = vpop.xlane.xlu1 %2120 }
 0x61e   :  { %v6856_v18 = vpop.eup %6855  ;;  %v2138_v17 = vmul.f32 %v6854_v14, %v7609_v50  ;;  %6859 = vrcp.f32 %v2121_v27 }
 0x61f   :  { %v2137_v41 = vmul.f32 %v6856_v18, %v7612_v55 }
 0x621   :  { %6025 = vmatprep.mubr.msk.f32.mxu0 %vm801_vm3, %v2137_v41 }
 0x622   :  { %v2112_v46 = vpop.xlane.xlu0 %2111  ;;  %v6858_v6 = vpop.eup %6857  ;;  %6026 = vmatmul.mubr.msk.f32.vlgmr.msra.gmra.mrb[18].mxu0 %vm801_vm3, %v2138_v17 }
 0x623   :  { %6861 = vrcp.f32 %v2112_v46  ;;  %6372 = vmatpush3.bf16.msra.mxu0 %v7624_v12  ;;  %v2143_v19 = vmul.f32 %v6858_v6, %v7619_v0  ;;  %v6391_v0 = vpack.c.bf16 %v6666_v61, %v6665_v33  ;;  %v6671_v46 = vunpack.i.h.bf16 %v7692_v1 }
 0x624   :  { %6378 = vmatprep.subr.bf16.mxu0 %v6377_v57  ;;  %v6670_v6 = vunpack.i.l.bf16 %v7692_v1 }
 0x625   :  { %6046 = vmatprep.mubr.msk.f32.mxu1 %vm801_vm3, %v2143_v19 }
 0x626   :  { %v2106_v59 = vpop.xlane.xlu0 %2105 }
 0x627   :  { %6863 = vrcp.f32 %v2106_v59 }
 0x628   :  { %v6860_v50 = vpop.eup %6859 }
 0x629   :  { %v2147_v12 = vmul.f32 %v6860_v50, %v7628_v60  ;;  %v6397_v50 = vpack.c.bf16 %v6671_v46, %v6670_v6 }
 0x62a   :  { %v2103_v55 = vpop.xlane.xlu0 %2102 }
 0x62b   :  { %6865 = vrcp.f32 %v2103_v55 }
 0x62d   :  { %v6862_v51 = vpop.eup %6861 }
 0x62e   :  { %v2124_v20 = vpop.xlane.xlu0 %2123  ;;  %v2144_v5 = vmul.f32 %v6862_v51, %v7633_v24  ;;  %v6674_v24 = vpop.permute.xlu1 %6673 }
 0x62f   :  { %6867 = vrcp.f32 %v2124_v20  ;;  %v6676_v62 = vunpack.i.h.bf16 %v6674_v24  ;;  %v6675_v4 = vunpack.i.l.bf16 %v6674_v24 }
 0x630   :  { %6047 = vmatmul.mubr.msk.f32.vlgmr.msra.gmra.mrb[32].mxu1 %vm801_vm3, %v2144_v5 }
 0x631   :  { %6384 = vmatpush3.bf16.msra.mxu1 %v6381_v10  ;;  %6060 = vmatprep.mubr.msk.f32.mxu1 %vm801_vm3, %v2147_v12  ;;  %v6864_v16 = vpop.eup %6863  ;;  %v6403_v54 = vpack.c.bf16 %v6676_v62, %v6675_v4 }
 0x632   :  { %6393 = vmatprep.subr.msk.bf16.mxu1 %vm7297_vm2, %v6391_v0  ;;  %v2118_v49 = vpop.xlane.xlu0 %2117  ;;  %v2142_v43 = vmul.f32 %v6864_v16, %v7637_v3 }
 0x633   :  { %6869 = vrcp.f32 %v2118_v49 }
 0x635   :  { %v6866_v56 = vpop.eup %6865 }
 0x636   :  { %v2738_v37 = vpop.permute.xlu0 %2737  ;;  %v2141_v60 = vmul.f32 %v6866_v56, %v7641_v7 }
 0x638   :  { %6039 = vmatprep.mubr.msk.f32.mxu0 %vm801_vm3, %v2141_v60  ;;  %v2733_v60 = vld [vmem:[#allocation8 + $0x20] sm:$0xff] }
 0x639   :  { %v6868_v34 = vpop.eup %6867  ;;  %6040 = vmatmul.mubr.msk.f32.vlgmr.msra.gmra.mrb[20].mxu0 %vm801_vm3, %v2142_v43 }
 0x63a   :  { %6380 = vmatpush3.bf16.msra.mxu0 %v6377_v57  ;;  %v2148_v13 = vmul.f32 %v6868_v34, %v7645_v11  ;;  %v2827_v15 = vpop.permute.xlu0 %2826 }
 0x63b   :  { %6387 = vmatprep.subr.msk.bf16.mxu0 %vm7297_vm2, %v6385_v52 }
 0x63c   :  { %6061 = vmatmul.mubr.msk.f32.vlgmr.msra.gmra.mrb[34].mxu1 %vm801_vm3, %v2148_v13 }
 0x63d   :  { %6396 = vmatpush3.bf16.xpose.msk.msra.mxu1 %vm7297_vm2, %v6391_v0  ;;  %6074 = vmatprep.mubr.msk.f32.mxu1 %vm272_vm1, %v2827_v15  ;;  %v6870_v41 = vpop.eup %6869 }
 0x63e   :  { %6405 = vmatprep.subr.msk.bf16.mxu1 %vm7297_vm2, %v6403_v54  ;;  %v2918_v3 = vpop.permute.xlu0 %2917  ;;  %v2146_v55 = vmul.f32 %v6870_v41, %v7649_v58 }
 0x642   :  { %v2920_v7 = vpop.permute.xlu0 %2919 }
 0x646   :  { %v6684_v10 = vpop.permute.xlu0 %6683 }
 0x647   :  { %v6686_v14 = vunpack.i.h.bf16 %v6684_v10  ;;  %v6685_v18 = vunpack.i.l.bf16 %v6684_v10 }
 0x649   :  { %v6415_v23 = vpack.c.bf16 %v6686_v14, %v6685_v18 }
 0x64a   :  { %v3100_v57 = vpop.permute.xlu0 %3099 }
 0x64e   :  { %v3191_v1 = vpop.permute.xlu0 %3190 }
 0x662   :  { %v2115_v11 = vpop.xlane.xlu1 %2114 }
 0x663   :  { %6871 = vrcp.f32 %v2115_v11 }
 0x666   :  { %v2829_v28 = vpop.permute.xlu1 %2828 }
 0x667   :  { %6075 = vmatmul.mubr.msk.f32.vlgmr.msra.gmra.mrb[36].mxu1 %vm272_vm1, %v2829_v28 }
 0x668   :  { %6408 = vmatpush3.bf16.xpose.msk.msra.mxu1 %vm7297_vm2, %v6403_v54 }
 0x669   :  { %6417 = vmatprep.subr.msk.bf16.mxu1 %vm7297_vm2, %v6415_v23 }
 0x66a   :  { %v6679_v27 = vpop.permute.xlu1 %6678 }
 0x66b   :  { %v6681_v58 = vunpack.i.h.bf16 %v6679_v27 }
 0x66d   :  { %v6872_v17 = vpop.eup %6871 }
 0x66e   :  { %v3009_v19 = vpop.permute.xlu1 %3008  ;;  %v2145_v59 = vmul.f32 %v6872_v17, %v7672_v8  ;;  %v6680_v8 = vunpack.i.l.bf16 %v6679_v27 }
 0x66f   :  { %6088 = vmatprep.mubr.msk.f32.mxu1 %vm272_vm1, %v3009_v19 }
 0x670   :  { %6053 = vmatprep.mubr.msk.f32.mxu0 %vm801_vm3, %v2145_v59  ;;  %v6409_v51 = vpack.c.bf16 %v6681_v58, %v6680_v8 }
 0x671   :  { %6054 = vmatmul.mubr.msk.f32.vlgmr.msra.gmra.mrb[22].mxu0 %vm801_vm3, %v2146_v55 }
 0x672   :  { %6390 = vmatpush3.bf16.xpose.msk.msra.mxu0 %vm7297_vm2, %v6385_v52  ;;  %v3011_v61 = vpop.permute.xlu1 %3010  ;;  %6067 = vmatprep.mubr.msk.f32.mxu0 %vm272_vm1, %v7688_v2 }
 0x673   :  { %6399 = vmatprep.subr.msk.bf16.mxu0 %vm7297_vm2, %v6397_v50  ;;  %6089 = vmatmul.mubr.msk.f32.vlgmr.msra.gmra.mrb[38].mxu1 %vm272_vm1, %v3011_v61 }
 0x674   :  { %6420 = vmatpush3.bf16.xpose.msk.msra.mxu1 %vm7297_vm2, %v6415_v23  ;;  %6102 = vmatprep.mubr.msk.f32.mxu1 %vm272_vm1, %v3191_v1 }
 0x676   :  { %v3102_v33 = vpop.permute.xlu1 %3101 }
 0x679   :  { %6068 = vmatmul.mubr.msk.f32.vlgmr.msra.gmra.mrb[24].mxu0 %vm272_vm1, %v2738_v37  ;;  %v2734_v37 = vld [vmem:[#allocation8 + $0x28] sm:$0xff] }
 0x67a   :  { %6402 = vmatpush3.bf16.xpose.msk.msra.mxu0 %vm7297_vm2, %v6397_v50  ;;  %6081 = vmatprep.mubr.msk.f32.mxu0 %vm272_vm1, %v2918_v3  ;;  %v3193_v2 = vpop.permute.xlu1 %3192 }
 0x67b   :  { %6411 = vmatprep.subr.msk.bf16.mxu0 %vm7297_vm2, %v6409_v51  ;;  %6103 = vmatmul.mubr.msk.f32.vlgmr.msra.gmra.mrb[40].mxu1 %vm272_vm1, %v3193_v2 }
 0x681   :  { %6082 = vmatmul.mubr.msk.f32.vlgmr.msra.gmra.mrb[26].mxu0 %vm272_vm1, %v2920_v7 }
 0x682   :  { %6414 = vmatpush3.bf16.xpose.msk.msra.mxu0 %vm7297_vm2, %v6409_v51  ;;  %6095 = vmatprep.mubr.msk.f32.mxu0 %vm272_vm1, %v3100_v57 }
 0x689   :  { %6096 = vmatmul.mubr.msk.f32.vlgmr.msra.gmra.mrb[28].mxu0 %vm272_vm1, %v3102_v33 }
 0x6ea   :  { %v7762_v20 = vpop.f32.mrb[30].mxu1 }
 0x6eb   :  { %v7764_v5 = vpop.f32.mrb[31].mxu1 }
 0x6f5   :  { %v7766_v12 = vpop.f32.mrb[18].mxu0 }
 0x6f6   :  { %v7768_v0 = vpop.f32.mrb[19].mxu0 }
 0x703   :  { %v7770_v49 = vpop.f32.mrb[32].mxu1 }
 0x704   :  { %v7772_v16 = vpop.f32.mrb[33].mxu1 }
 0x70c   :  { %v7774_v56 = vpop.f32.mrb[20].mxu0 }
 0x70d   :  { %v7776_v63 = vpop.f32.mrb[21].mxu0 }
 0x70f   :  { %v7778_v9 = vpop.f32.mrb[34].mxu1 }
 0x710   :  { %v7780_v24 = vpop.f32.mrb[35].mxu1 }
 0x73a   :  { %v6076_v43 = vpop.f32.mrb[36].mxu1 }
 0x73b   :  { %v7782_v62 = vadd.f32 %v6076_v43, %v2734_v37  ;;  %v2908_v4 = vpop.f32.mrb[37].mxu1 }
 0x73c   :  { %v7784_v34 = vadd.f32 %v2908_v4, %v2733_v60 }
 0x73d   :  { %v3290_v52 = vsel %vm801_vm3, %v7782_v62, -inf }
 0x73e   :  { %3291 = vmax.xlane.f32.xlu1 %v3290_v52  ;;  %v3287_v13 = vsel %vm801_vm3, %v7784_v34, -inf }
 0x73f   :  { %3288 = vmax.xlane.f32.xlu0 %v3287_v13 }
 0x744   :  { %v7790_v54 = vpop.f32.mrb[22].mxu0 }
 0x745   :  { %v7792_v15 = vpop.f32.mrb[23].mxu0 }
 0x746   :  { %v6090_v3 = vpop.f32.mrb[38].mxu1 }
 0x747   :  { %v3090_v7 = vpop.f32.mrb[39].mxu1  ;;  %v7816_v1 = vadd.f32 %v6090_v3, %v2734_v37 }
 0x748   :  { %v7798_v23 = vadd.f32 %v3090_v7, %v2733_v60 }
 0x749   :  { %v3302_v43 = vsel %vm801_vm3, %v7816_v1, -inf }
 0x74a   :  { %v3299_v6 = vsel %vm801_vm3, %v7798_v23, -inf }
 0x74c   :  { %v6069_v10 = vpop.f32.mrb[24].mxu0 }
 0x74d   :  { %v7794_v11 = vadd.f32 %v6069_v10, %v2734_v37  ;;  %v2817_v14 = vpop.f32.mrb[25].mxu0 }
 0x74e   :  { %v7796_v18 = vadd.f32 %v2817_v14, %v2733_v60  ;;  %v6104_v28 = vpop.f32.mrb[40].mxu1 }
 0x74f   :  { %v3284_v27 = vsel %vm801_vm3, %v7794_v11, -inf  ;;  %v3272_v41 = vpop.f32.mrb[41].mxu1  ;;  %v7826_v4 = vadd.f32 %v6104_v28, %v2734_v37 }
 0x750   :  { %3285 = vmax.xlane.f32.xlu1 %v3284_v27  ;;  %v3281_v17 = vsel %vm801_vm3, %v7796_v18, -inf  ;;  %v7804_v46 = vadd.f32 %v3272_v41, %v2733_v60 }
 0x751   :  { %3282 = vmax.xlane.f32.xlu0 %v3281_v17  ;;  %v3314_v13 = vsel %vm801_vm3, %v7826_v4, -inf }
 0x752   :  { %v3311_v50 = vsel %vm801_vm3, %v7804_v46, -inf }
 0x754   :  { %v6083_v57 = vpop.f32.mrb[26].mxu0  ;;  %3300 = vmax.xlane.f32.xlu1 %v3299_v6 }
 0x755   :  { %v7808_v19 = vadd.f32 %v6083_v57, %v2734_v37  ;;  %v2999_v59 = vpop.f32.mrb[27].mxu0 }
 0x756   :  { %v7810_v55 = vadd.f32 %v2999_v59, %v2733_v60 }
 0x757   :  { %v3296_v61 = vsel %vm801_vm3, %v7808_v19, -inf }
 0x758   :  { %3312 = vmax.xlane.f32.xlu1 %v3311_v50  ;;  %3297 = vmax.xlane.f32.xlu0 %v3296_v61  ;;  %v3293_v58 = vsel %vm801_vm3, %v7810_v55, -inf }
 0x75c   :  { %v6097_v8 = vpop.f32.mrb[28].mxu0  ;;  %3294 = vmax.xlane.f32.xlu0 %v3293_v58 }
 0x75d   :  { %v3181_v33 = vpop.f32.mrb[29].mxu0  ;;  %v7822_v2 = vadd.f32 %v6097_v8, %v2734_v37 }
 0x75e   :  { %v7820_v51 = vadd.f32 %v3181_v33, %v2733_v60 }
 0x75f   :  { %v3308_v52 = vsel %vm801_vm3, %v7822_v2, -inf }
 0x760   :  { %3303 = vmax.xlane.f32.xlu0 %v3302_v43  ;;  %v3305_v37 = vsel %vm801_vm3, %v7820_v51, -inf }
 0x764   :  { %3309 = vmax.xlane.f32.xlu0 %v3308_v52 }
 0x768   :  { %3315 = vmax.xlane.f32.xlu0 %v3314_v13 }
 0x769   :  { %6688 = vrot.lane.b32.xlu1 %v7247_v30, %s7100_s29 }
 0x76d   :  { %6698 = vrot.lane.b32.xlu1 %v7243_v29, %s7100_s29 }
 0x771   :  { %6703 = vrot.lane.b32.xlu1 %v7261_v38, %s7100_s29 }
 0x775   :  { %6713 = vrot.lane.b32.xlu1 %v7286_v48, %s7100_s29 }
 0x779   :  { %6723 = vrot.lane.b32.xlu1 %v7265_v39, %s7101_s30 }
 0x77e   :  { %6693 = vrot.lane.b32.xlu0 %v7265_v39, %s7100_s29 }
 0x782   :  { %6708 = vrot.lane.b32.xlu0 %v7277_v44, %s7100_s29 }
 0x786   :  { %6718 = vrot.lane.b32.xlu0 %v7247_v30, %s7101_s30 }
 0x78a   :  { %6728 = vrot.lane.b32.xlu0 %v7243_v29, %s7101_s30 }
 0x79d   :  { %3306 = vmax.xlane.f32.xlu1 %v3305_v37 }
 0x7ae   :  { %3999 = vrot.lane.b32.xlu1 %v7235_v25, %s7102_s7 }
 0x7cb   :  { %v3292_v60 = vpop.xlane.xlu1 %3291 }
 0x7cc   :  { %v3320_v3 = vsub.f32 %v7782_v62, %v3292_v60  ;;  %v3289_v7 = vpop.xlane.xlu0 %3288 }
 0x7cd   :  { %v3319_v10 = vsub.f32 %v7784_v34, %v3289_v7 }
 0x7ce   :  { %v3335_v14 = vmul.f32 1.442695, %v3320_v3 }
 0x7cf   :  { %v3333_v28 = vmul.f32 1.442695, %v3319_v10 }
 0x7d0   :  { %6873 = vpow2.f32 %v3335_v14 }
 0x7d1   :  { %6875 = vpow2.f32 %v3333_v28 }
 0x7da   :  { %v7850_v27 = vpop.eup %6873 }
 0x7db   :  { %v3362_v41 = vsel %vm801_vm3, %v7850_v27, 0.0  ;;  %v7854_v17 = vpop.eup %6875 }
 0x7dc   :  { %3363 = vadd.xlane.f32.xlu1 %v3362_v41  ;;  %v3359_v34 = vsel %vm801_vm3, %v7854_v17, 0.0 }
 0x7dd   :  { %v3286_v6 = vpop.xlane.xlu1 %3285 }
 0x7de   :  { %v3318_v25 = vsub.f32 %v7794_v11, %v3286_v6  ;;  %v3283_v57 = vpop.xlane.xlu0 %3282 }
 0x7df   :  { %v3317_v62 = vsub.f32 %v7796_v18, %v3283_v57 }
 0x7e0   :  { %v3331_v59 = vmul.f32 1.442695, %v3318_v25  ;;  %3360 = vadd.xlane.f32.xlu1 %v3359_v34 }
 0x7e1   :  { %v3329_v50 = vmul.f32 1.442695, %v3317_v62  ;;  %v3301_v61 = vpop.xlane.xlu1 %3300 }
 0x7e2   :  { %6877 = vpow2.f32 %v3331_v59  ;;  %v3323_v58 = vsub.f32 %v7798_v23, %v3301_v61 }
 0x7e3   :  { %6879 = vpow2.f32 %v3329_v50 }
 0x7e4   :  { %v3341_v8 = vmul.f32 1.442695, %v3323_v58 }
 0x7e5   :  { %v3313_v33 = vpop.xlane.xlu1 %3312  ;;  %v3298_v43 = vpop.xlane.xlu0 %3297 }
 0x7e6   :  { %6881 = vpow2.f32 %v3341_v8  ;;  %v3327_v11 = vsub.f32 %v7804_v46, %v3313_v33  ;;  %v3322_v7 = vsub.f32 %v7808_v19, %v3298_v43 }
 0x7e8   :  { %v3349_v52 = vmul.f32 1.442695, %v3327_v11  ;;  %v3339_v19 = vmul.f32 1.442695, %v3322_v7 }
 0x7e9   :  { %v6689_v13 = vpop.permute.xlu1 %6688  ;;  %v3295_v18 = vpop.xlane.xlu0 %3294 }
 0x7ea   :  { %6883 = vpow2.f32 %v3349_v52  ;;  %v6691_v37 = vunpack.i.h.bf16 %v6689_v13  ;;  %v6690_v60 = vunpack.i.l.bf16 %v6689_v13  ;;  %v3321_v34 = vsub.f32 %v7810_v55, %v3295_v18 }
 0x7ec   :  { %v7862_v3 = vpop.eup %6877  ;;  %v6421_v10 = vpack.c.bf16 %v6691_v37, %v6690_v60  ;;  %v3337_v8 = vmul.f32 1.442695, %v3321_v34 }
 0x7ed   :  { %v7865_v14 = vpop.eup %6879  ;;  %v6699_v23 = vpop.permute.xlu1 %6698  ;;  %v3356_v41 = vsel %vm801_vm3, %v7862_v3, 0.0 }
 0x7ee   :  { %v3304_v28 = vpop.xlane.xlu0 %3303  ;;  %v6701_v6 = vunpack.i.h.bf16 %v6699_v23  ;;  %v6700_v46 = vunpack.i.l.bf16 %v6699_v23  ;;  %6422 = vmatprep.subr.bf16.mxu0 %v6421_v10  ;;  %3357 = vadd.xlane.f32.xlu0 %v3356_v41  ;;  %v3353_v57 = vsel %vm801_vm3, %v7865_v14, 0.0 }
 0x7ef   :  { %v3324_v25 = vsub.f32 %v7816_v1, %v3304_v28  ;;  %6424 = vmatpush3.bf16.msra.mxu0 %v6421_v10  ;;  %3354 = vadd.xlane.f32.xlu1 %v3353_v57 }
 0x7f0   :  { %v7872_v62 = vpop.eup %6881  ;;  %v7875_v50 = vpack.c.bf16 %v6701_v6, %v6700_v46 }
 0x7f1   :  { %v3343_v59 = vmul.f32 1.442695, %v3324_v25  ;;  %v3371_v58 = vsel %vm801_vm3, %v7872_v62, 0.0  ;;  %v6704_v11 = vpop.permute.xlu1 %6703 }
 0x7f2   :  { %v3310_v61 = vpop.xlane.xlu0 %3309  ;;  %6430 = vmatprep.subr.bf16.mxu0 %v7875_v50  ;;  %v6706_v60 = vunpack.i.h.bf16 %v6704_v11  ;;  %v6705_v7 = vunpack.i.l.bf16 %v6704_v11 }
 0x7f3   :  { %6885 = vpow2.f32 %v3343_v59  ;;  %3372 = vadd.xlane.f32.xlu1 %v3371_v58  ;;  %v3326_v52 = vsub.f32 %v7822_v2, %v3310_v61 }
 0x7f4   :  { %v7880_v1 = vpop.eup %6883  ;;  %6887 = vpow2.f32 %v3339_v19  ;;  %v6433_v2 = vpack.c.bf16 %v6706_v60, %v6705_v7 }
 0x7f5   :  { %v3383_v55 = vsel %vm801_vm3, %v7880_v1, 0.0  ;;  %6889 = vpow2.f32 %v3337_v8  ;;  %v3347_v28 = vmul.f32 1.442695, %v3326_v52  ;;  %v6714_v58 = vpop.permute.xlu1 %6713 }
 0x7f6   :  { %v3316_v33 = vpop.xlane.xlu0 %3315  ;;  %v6715_v52 = vunpack.i.l.bf16 %v6714_v58 }
 0x7f7   :  { %v3328_v43 = vsub.f32 %v7826_v4, %v3316_v33  ;;  %3384 = vadd.xlane.f32.xlu1 %v3383_v55 }
 0x7f9   :  { %v3351_v13 = vmul.f32 1.442695, %v3328_v43  ;;  %v7910_v8 = vpop.permute.xlu1 %6723 }
 0x7fa   :  { %v6694_v18 = vpop.permute.xlu0 %6693 }
 0x7fb   :  { %v6696_v37 = vunpack.i.h.bf16 %v6694_v18  ;;  %v6695_v10 = vunpack.i.l.bf16 %v6694_v18  ;;  %6891 = vpow2.f32 %v3351_v13 }
 0x7fc   :  { %6893 = vpow2.f32 %v3347_v28 }
 0x7fd   :  { %v7886_v23 = vpop.eup %6885  ;;  %v6425_v6 = vpack.c.bf16 %v6696_v37, %v6695_v10 }
 0x7fe   :  { %v3374_v41 = vsel %vm801_vm3, %v7886_v23, 0.0  ;;  %v7890_v4 = vpop.eup %6887 }
 0x7ff   :  { %3375 = vadd.xlane.f32.xlu0 %v3374_v41  ;;  %6426 = vmatprep.subr.bf16.mxu1 %v6425_v6  ;;  %v3368_v46 = vsel %vm801_vm3, %v7890_v4, 0.0  ;;  %v7894_v25 = vpop.eup %6889 }
 0x800   :  { %6428 = vmatpush3.bf16.msra.mxu1 %v6425_v6  ;;  %v3365_v57 = vsel %vm801_vm3, %v7894_v25, 0.0 }
 0x801   :  { %6434 = vmatprep.subr.bf16.mxu1 %v6433_v2 }
 0x803   :  { %3369 = vadd.xlane.f32.xlu0 %v3368_v46 }
 0x805   :  { %v7898_v19 = vpop.eup %6891 }
 0x806   :  { %v3386_v34 = vsel %vm801_vm3, %v7898_v19, 0.0  ;;  %v7904_v59 = vpop.eup %6893 }
 0x807   :  { %3366 = vadd.xlane.f32.xlu0 %v3365_v57  ;;  %v3380_v61 = vsel %vm801_vm3, %v7904_v59, 0.0 }
 0x808   :  { %6733 = vrot.lane.b32.xlu1 %v7261_v38, %s7101_s30 }
 0x80b   :  { %3387 = vadd.xlane.f32.xlu0 %v3386_v34 }
 0x80f   :  { %3381 = vadd.xlane.f32.xlu0 %v3380_v61 }
 0x825   :  { %4001 = vrot.lane.b32.xlu0 %v7231_v21, %s7102_s7 }
 0x829   :  { %4090 = vrot.lane.b32.xlu0 %v7256_v36, %s7102_s7 }
 0x82a   :  { %v3307_v33 = vpop.xlane.xlu1 %3306 }
 0x82b   :  { %v3325_v55 = vsub.f32 %v7820_v51, %v3307_v33  ;;  %v6725_v33 = vunpack.i.l.bf16 %v7910_v8 }
 0x82d   :  { %6738 = vrot.lane.b32.xlu0 %v7277_v44, %s7101_s30  ;;  %v3345_v43 = vmul.f32 1.442695, %v3325_v55 }
 0x82f   :  { %6895 = vpow2.f32 %v3345_v43 }
 0x831   :  { %4183 = vrot.lane.b32.xlu0 %v7233_v22, %s7102_s7  ;;  %v7941_v22 = vpop.permute.xlu1 %3999 }
 0x835   :  { %4272 = vrot.lane.b32.xlu0 %v7253_v35, %s7102_s7 }
 0x839   :  { %4363 = vrot.lane.b32.xlu0 %v7271_v42, %s7102_s7  ;;  %v7923_v21 = vpop.eup %6895  ;;  %v6709_v42 = vpop.permute.xlu0 %6708 }
 0x83a   :  { %v3377_v36 = vsel %vm801_vm3, %v7923_v21, 0.0  ;;  %v6711_v28 = vunpack.i.h.bf16 %v6709_v42  ;;  %v6710_v41 = vunpack.i.l.bf16 %v6709_v42 }
 0x83b   :  { %3378 = vadd.xlane.f32.xlu1 %v3377_v36 }
 0x83c   :  { %v6437_v34 = vpack.c.bf16 %v6711_v28, %v6710_v41 }
 0x83d   :  { %4454 = vrot.lane.b32.xlu0 %v7281_v47, %s7102_s7 }
 0x84c   :  { %4092 = vrot.lane.b32.xlu1 %v7251_v32, %s7102_s7 }
 0x850   :  { %4181 = vrot.lane.b32.xlu1 %v7237_v26, %s7102_s7  ;;  %v7943_v26 = vpop.permute.xlu0 %6718 }
 0x854   :  { %6743 = vrot.lane.b32.xlu1 %v7286_v48, %s7101_s30  ;;  %v7945_v51 = vpop.permute.xlu0 %6728 }
 0x858   :  { %4274 = vrot.lane.b32.xlu1 %v7249_v31, %s7102_s7  ;;  %v6716_v31 = vunpack.i.h.bf16 %v6714_v58  ;;  %v6726_v58 = vunpack.i.h.bf16 %v7910_v8  ;;  %v6721_v8 = vunpack.i.h.bf16 %v7943_v26 }
 0x85a   :  { %v6441_v18 = vpack.c.bf16 %v6716_v31, %v6715_v52 }
 0x85c   :  { %4365 = vrot.lane.b32.xlu1 %v7269_v40, %s7102_s7 }
 0x860   :  { %4456 = vrot.lane.b32.xlu1 %v7279_v45, %s7102_s7 }
 0x869   :  { %v3364_v35 = vpop.xlane.xlu1 %3363 }
 0x86a   :  { %6897 = vrcp.f32 %v3364_v35 }
 0x86d   :  { %v3361_v32 = vpop.xlane.xlu1 %3360 }
 0x86e   :  { %6899 = vrcp.f32 %v3361_v32 }
 0x874   :  { %v6898_v47 = vpop.eup %6897 }
 0x875   :  { %v3404_v13 = vmul.f32 %v6898_v47, %v7850_v27 }
 0x878   :  { %v6900_v11 = vpop.eup %6899 }
 0x879   :  { %v3403_v40 = vmul.f32 %v6900_v11, %v7854_v17 }
 0x87b   :  { %v3358_v45 = vpop.xlane.xlu0 %3357  ;;  %6116 = vmatprep.mubr.msk.f32.mxu1 %vm801_vm3, %v3403_v40 }
 0x87c   :  { %6117 = vmatmul.mubr.msk.f32.vlgmr.msra.gmra.mrb[42].mxu1 %vm801_vm3, %v3404_v13  ;;  %6901 = vrcp.f32 %v3358_v45  ;;  %v3355_v37 = vpop.xlane.xlu1 %3354 }
 0x87d   :  { %6436 = vmatpush3.bf16.msra.mxu1 %v6433_v2  ;;  %6903 = vrcp.f32 %v3355_v37 }
 0x87e   :  { %6442 = vmatprep.subr.bf16.mxu1 %v6441_v18 }
 0x880   :  { %v3373_v60 = vpop.xlane.xlu1 %3372 }
 0x881   :  { %6905 = vrcp.f32 %v3373_v60 }
 0x884   :  { %v3385_v17 = vpop.xlane.xlu1 %3384 }
 0x885   :  { %6907 = vrcp.f32 %v3385_v17  ;;  %v6731_v17 = vunpack.i.h.bf16 %v7945_v51 }
 0x886   :  { %v6902_v7 = vpop.eup %6901 }
 0x887   :  { %v6904_v10 = vpop.eup %6903  ;;  %v3402_v6 = vmul.f32 %v6902_v7, %v7862_v3 }
 0x888   :  { %v3401_v27 = vmul.f32 %v6904_v10, %v7865_v14  ;;  %v6734_v47 = vpop.permute.xlu1 %6733 }
 0x889   :  { %v6736_v52 = vunpack.i.h.bf16 %v6734_v47  ;;  %v6735_v40 = vunpack.i.l.bf16 %v6734_v47 }
 0x88a   :  { %6109 = vmatprep.mubr.msk.f32.mxu0 %vm801_vm3, %v3401_v27  ;;  %v6730_v27 = vunpack.i.l.bf16 %v7945_v51 }
 0x88b   :  { %v6906_v57 = vpop.eup %6905  ;;  %6110 = vmatmul.mubr.msk.f32.vlgmr.msra.gmra.mrb[30].mxu0 %vm801_vm3, %v3402_v6 }
 0x88c   :  { %v3376_v46 = vpop.xlane.xlu0 %3375  ;;  %6432 = vmatpush3.bf16.msra.mxu0 %v7875_v50  ;;  %v3407_v2 = vmul.f32 %v6906_v57, %v7872_v62  ;;  %v6451_v62 = vpack.c.bf16 %v6726_v58, %v6725_v33 }
 0x88d   :  { %6909 = vrcp.f32 %v3376_v46  ;;  %6438 = vmatprep.subr.bf16.mxu0 %v6437_v34 }
 0x88e   :  { %6130 = vmatprep.mubr.msk.f32.mxu1 %vm801_vm3, %v3407_v2 }
 0x88f   :  { %v6908_v3 = vpop.eup %6907 }
 0x890   :  { %v3370_v61 = vpop.xlane.xlu0 %3369  ;;  %v3411_v50 = vmul.f32 %v6908_v3, %v7880_v1 }
 0x891   :  { %6911 = vrcp.f32 %v3370_v61 }
 0x894   :  { %v3367_v14 = vpop.xlane.xlu0 %3366 }
 0x895   :  { %6913 = vrcp.f32 %v3367_v14  ;;  %v6457_v14 = vpack.c.bf16 %v6731_v17, %v6730_v27 }
 0x897   :  { %v6910_v55 = vpop.eup %6909 }
 0x898   :  { %v3408_v43 = vmul.f32 %v6910_v55, %v7886_v23  ;;  %v3388_v36 = vpop.xlane.xlu0 %3387  ;;  %v6720_v23 = vunpack.i.l.bf16 %v7943_v26  ;;  %v6463_v26 = vpack.c.bf16 %v6736_v52, %v6735_v40 }
 0x899   :  { %6915 = vrcp.f32 %v3388_v36 }
 0x89a   :  { %6131 = vmatmul.mubr.msk.f32.vlgmr.msra.gmra.mrb[44].mxu1 %vm801_vm3, %v3408_v43  ;;  %v6445_v45 = vpack.c.bf16 %v6721_v8, %v6720_v23 }
 0x89b   :  { %6444 = vmatpush3.bf16.msra.mxu1 %v6441_v18  ;;  %6144 = vmatprep.mubr.msk.f32.mxu1 %vm801_vm3, %v3411_v50  ;;  %v6912_v42 = vpop.eup %6911 }
 0x89c   :  { %6453 = vmatprep.subr.msk.bf16.mxu1 %vm7297_vm2, %v6451_v62  ;;  %v3382_v35 = vpop.xlane.xlu0 %3381  ;;  %v3406_v31 = vmul.f32 %v6912_v42, %v7890_v4 }
 0x89d   :  { %6917 = vrcp.f32 %v3382_v35 }
 0x89f   :  { %v6914_v32 = vpop.eup %6913 }
 0x8a0   :  { %v4002_v11 = vpop.permute.xlu0 %4001  ;;  %v3405_v1 = vmul.f32 %v6914_v32, %v7894_v25 }
 0x8a2   :  { %6123 = vmatprep.mubr.msk.f32.mxu0 %vm801_vm3, %v3405_v1 }
 0x8a3   :  { %v6916_v13 = vpop.eup %6915  ;;  %6124 = vmatmul.mubr.msk.f32.vlgmr.msra.gmra.mrb[32].mxu0 %vm801_vm3, %v3406_v31 }
 0x8a4   :  { %v3412_v18 = vmul.f32 %v6916_v13, %v7898_v19  ;;  %6440 = vmatpush3.bf16.msra.mxu0 %v6437_v34  ;;  %v4091_v37 = vpop.permute.xlu0 %4090  ;;  %v3998_v13 = vld [vmem:[#allocation8 + $0x38] sm:$0xff] }
 0x8a5   :  { %6447 = vmatprep.subr.msk.bf16.mxu0 %vm7297_vm2, %v6445_v45 }
 0x8a6   :  { %6145 = vmatmul.mubr.msk.f32.vlgmr.msra.gmra.mrb[46].mxu1 %vm801_vm3, %v3412_v18  ;;  %v3997_v18 = vld [vmem:[#allocation8 + $0x30] sm:$0xff] }
 0x8a7   :  { %6456 = vmatpush3.bf16.xpose.msk.msra.mxu1 %vm7297_vm2, %v6451_v62  ;;  %6158 = vmatprep.mubr.msk.f32.mxu1 %vm272_vm1, %v4091_v37  ;;  %v6918_v28 = vpop.eup %6917 }
 0x8a8   :  { %6465 = vmatprep.subr.msk.bf16.mxu1 %vm7297_vm2, %v6463_v26  ;;  %v6739_v4 = vpop.permute.xlu0 %6738  ;;  %v3410_v34 = vmul.f32 %v6918_v28, %v7904_v59 }
 0x8a9   :  { %v6741_v59 = vunpack.i.h.bf16 %v6739_v4 }
 0x8ac   :  { %v4184_v25 = vpop.permute.xlu0 %4183 }
 0x8b0   :  { %v4273_v7 = vpop.permute.xlu0 %4272 }
 0x8b4   :  { %v4364_v6 = vpop.permute.xlu0 %4363 }
 0x8b8   :  { %v4455_v51 = vpop.permute.xlu0 %4454 }
 0x8c8   :  { %v3379_v19 = vpop.xlane.xlu1 %3378 }
 0x8c9   :  { %6919 = vrcp.f32 %v3379_v19 }
 0x8cc   :  { %v4093_v60 = vpop.permute.xlu1 %4092 }
 0x8cd   :  { %6159 = vmatmul.mubr.msk.f32.vlgmr.msra.gmra.mrb[48].mxu1 %vm272_vm1, %v4093_v60 }
 0x8ce   :  { %6468 = vmatpush3.bf16.xpose.msk.msra.mxu1 %vm7297_vm2, %v6463_v26  ;;  %6172 = vmatprep.mubr.msk.f32.mxu1 %vm272_vm1, %v4273_v7 }
 0x8d0   :  { %v4182_v10 = vpop.permute.xlu1 %4181 }
 0x8d3   :  { %v6920_v41 = vpop.eup %6919 }
 0x8d4   :  { %v6744_v46 = vpop.permute.xlu1 %6743  ;;  %v3409_v57 = vmul.f32 %v6920_v41, %v7923_v21  ;;  %v6740_v21 = vunpack.i.l.bf16 %v6739_v4 }
 0x8d5   :  { %v6746_v2 = vunpack.i.h.bf16 %v6744_v46  ;;  %v6745_v61 = vunpack.i.l.bf16 %v6744_v46 }
 0x8d6   :  { %6137 = vmatprep.mubr.msk.f32.mxu0 %vm801_vm3, %v3409_v57  ;;  %v6469_v55 = vpack.c.bf16 %v6741_v59, %v6740_v21 }
 0x8d7   :  { %v6475_v3 = vpack.c.bf16 %v6746_v2, %v6745_v61  ;;  %6138 = vmatmul.mubr.msk.f32.vlgmr.msra.gmra.mrb[34].mxu0 %vm801_vm3, %v3410_v34 }
 0x8d8   :  { %6450 = vmatpush3.bf16.xpose.msk.msra.mxu0 %vm7297_vm2, %v6445_v45  ;;  %v4275_v58 = vpop.permute.xlu1 %4274  ;;  %6151 = vmatprep.mubr.msk.f32.mxu0 %vm272_vm1, %v7941_v22 }
 0x8d9   :  { %6459 = vmatprep.subr.msk.bf16.mxu0 %vm7297_vm2, %v6457_v14  ;;  %6173 = vmatmul.mubr.msk.f32.vlgmr.msra.gmra.mrb[50].mxu1 %vm272_vm1, %v4275_v58 }
 0x8da   :  { %6477 = vmatprep.subr.msk.bf16.mxu1 %vm7297_vm2, %v6475_v3  ;;  %6186 = vmatprep.mubr.msk.f32.mxu1 %vm272_vm1, %v4455_v51 }
 0x8db   :  { %6480 = vmatpush3.bf16.xpose.msk.msra.mxu1 %vm7297_vm2, %v6475_v3 }
 0x8dc   :  { %v4366_v33 = vpop.permute.xlu1 %4365 }
 0x8df   :  { %6152 = vmatmul.mubr.msk.f32.vlgmr.msra.gmra.mrb[36].mxu0 %vm272_vm1, %v4002_v11 }
 0x8e0   :  { %6462 = vmatpush3.bf16.xpose.msk.msra.mxu0 %vm7297_vm2, %v6457_v14  ;;  %6165 = vmatprep.mubr.msk.f32.mxu0 %vm272_vm1, %v4182_v10  ;;  %v4457_v22 = vpop.permute.xlu1 %4456 }
 0x8e1   :  { %6471 = vmatprep.subr.msk.bf16.mxu0 %vm7297_vm2, %v6469_v55 }
 0x8e2   :  { %6187 = vmatmul.mubr.msk.f32.vlgmr.msra.gmra.mrb[52].mxu1 %vm272_vm1, %v4457_v22 }
 0x8e7   :  { %6166 = vmatmul.mubr.msk.f32.vlgmr.msra.gmra.mrb[38].mxu0 %vm272_vm1, %v4184_v25 }
 0x8e8   :  { %6474 = vmatpush3.bf16.xpose.msk.msra.mxu0 %vm7297_vm2, %v6469_v55  ;;  %6179 = vmatprep.mubr.msk.f32.mxu0 %vm272_vm1, %v4364_v6 }
 0x8ef   :  { %6180 = vmatmul.mubr.msk.f32.vlgmr.msra.gmra.mrb[40].mxu0 %vm272_vm1, %v4366_v33 }
 0x94f   :  { %v8015_v43 = vpop.f32.mrb[42].mxu1 }
 0x950   :  { %v8017_v36 = vpop.f32.mrb[43].mxu1 }
 0x95e   :  { %v8019_v50 = vpop.f32.mrb[30].mxu0 }
 0x95f   :  { %v8021_v62 = vpop.f32.mrb[31].mxu0 }
 0x96d   :  { %v8023_v35 = vpop.f32.mrb[44].mxu1 }
 0x96e   :  { %v8025_v42 = vpop.f32.mrb[45].mxu1 }
 0x976   :  { %v8027_v32 = vpop.f32.mrb[32].mxu0 }
 0x977   :  { %v8029_v53 = vpop.f32.mrb[33].mxu0 }
 0x979   :  { %v8031_v8 = vpop.f32.mrb[46].mxu1 }
 0x97a   :  { %v8033_v23 = vpop.f32.mrb[47].mxu1 }
 0x9a0   :  { %v6160_v47 = vpop.f32.mrb[48].mxu1 }
 0x9a1   :  { %v4172_v11 = vpop.f32.mrb[49].mxu1  ;;  %v4178_v17 = vadd.f32 %v6160_v47, %v3998_v13 }
 0x9a2   :  { %v4173_v7 = vadd.f32 %v4172_v11, %v3997_v18 }
 0x9a3   :  { %v4554_v14 = vsel %vm801_vm3, %v4178_v17, -inf }
 0x9a4   :  { %v4551_v6 = vsel %vm801_vm3, %v4173_v7, -inf }
 0x9aa   :  { %v8035_v1 = vpop.f32.mrb[34].mxu0 }
 0x9ab   :  { %v8037_v31 = vpop.f32.mrb[35].mxu0 }
 0x9ac   :  { %v6174_v52 = vpop.f32.mrb[50].mxu1 }
 0x9ad   :  { %v4354_v40 = vpop.f32.mrb[51].mxu1  ;;  %v4360_v3 = vadd.f32 %v6174_v52, %v3998_v13 }
 0x9ae   :  { %v4355_v25 = vadd.f32 %v4354_v40, %v3997_v18 }
 0x9af   :  { %v4566_v47 = vsel %vm801_vm3, %v4360_v3, -inf }
 0x9b0   :  { %v4563_v41 = vsel %vm801_vm3, %v4355_v25, -inf }
 0x9b2   :  { %v6153_v45 = vpop.f32.mrb[36].mxu0 }
 0x9b3   :  { %v8039_v26 = vadd.f32 %v6153_v45, %v3998_v13  ;;  %v4081_v37 = vpop.f32.mrb[37].mxu0 }
 0x9b4   :  { %v4082_v4 = vadd.f32 %v4081_v37, %v3997_v18 }
 0x9b5   :  { %v6188_v19 = vpop.f32.mrb[52].mxu1  ;;  %v4548_v60 = vsel %vm801_vm3, %v8039_v26, -inf }
 0x9b6   :  { %4549 = vmax.xlane.f32.xlu1 %v4548_v60  ;;  %v4536_v10 = vpop.f32.mrb[53].mxu1  ;;  %v4545_v28 = vsel %vm801_vm3, %v4082_v4, -inf  ;;  %v8057_v11 = vadd.f32 %v6188_v19, %v3998_v13 }
 0x9b7   :  { %4546 = vmax.xlane.f32.xlu0 %v4545_v28  ;;  %v4537_v34 = vadd.f32 %v4536_v10, %v3997_v18 }
 0x9b8   :  { %v4578_v40 = vsel %vm801_vm3, %v8057_v11, -inf }
 0x9b9   :  { %v4575_v51 = vsel %vm801_vm3, %v4537_v34, -inf }
 0x9ba   :  { %v6167_v27 = vpop.f32.mrb[38].mxu0  ;;  %4564 = vmax.xlane.f32.xlu1 %v4563_v41 }
 0x9bb   :  { %v4263_v46 = vpop.f32.mrb[39].mxu0  ;;  %4552 = vmax.xlane.f32.xlu0 %v4551_v6  ;;  %v8046_v2 = vadd.f32 %v6167_v27, %v3998_v13 }
 0x9bc   :  { %v4264_v57 = vadd.f32 %v4263_v46, %v3997_v18 }
 0x9bd   :  { %v4560_v59 = vsel %vm801_vm3, %v8046_v2, -inf }
 0x9be   :  { %v4557_v61 = vsel %vm801_vm3, %v4264_v57, -inf }
 0x9bf   :  { %4558 = vmax.xlane.f32.xlu1 %v4557_v61  ;;  %4555 = vmax.xlane.f32.xlu0 %v4554_v14 }
 0x9c2   :  { %v6181_v58 = vpop.f32.mrb[40].mxu0 }
 0x9c3   :  { %v4445_v21 = vpop.f32.mrb[41].mxu0  ;;  %4576 = vmax.xlane.f32.xlu1 %v4575_v51  ;;  %4561 = vmax.xlane.f32.xlu0 %v4560_v59  ;;  %v8053_v55 = vadd.f32 %v6181_v58, %v3998_v13 }
 0x9c4   :  { %v4446_v33 = vadd.f32 %v4445_v21, %v3997_v18 }
 0x9c5   :  { %v4572_v52 = vsel %vm801_vm3, %v8053_v55, -inf }
 0x9c6   :  { %v4569_v22 = vsel %vm801_vm3, %v4446_v33, -inf }
 0x9c7   :  { %4570 = vmax.xlane.f32.xlu1 %v4569_v22  ;;  %4567 = vmax.xlane.f32.xlu0 %v4566_v47 }
 0x9cb   :  { %4573 = vmax.xlane.f32.xlu0 %v4572_v52 }
 0x9cf   :  { %4579 = vmax.xlane.f32.xlu0 %v4578_v40 }
 0x9d8   :  { %6748 = vrot.lane.b32.xlu1 %v7247_v30, %s7103_s8 }
 0x9dc   :  { %6758 = vrot.lane.b32.xlu1 %v7243_v29, %s7103_s8 }
 0x9e0   :  { %6763 = vrot.lane.b32.xlu1 %v7261_v38, %s7103_s8 }
 0x9e5   :  { %6753 = vrot.lane.b32.xlu0 %v7265_v39, %s7103_s8 }
 0xa43   :  { %v4550_v13 = vpop.xlane.xlu1 %4549 }
 0xa44   :  { %v4547_v45 = vpop.xlane.xlu0 %4546  ;;  %v4582_v6 = vsub.f32 %v8039_v26, %v4550_v13 }
 0xa45   :  { %v4581_v18 = vsub.f32 %v4082_v4, %v4547_v45 }
 0xa46   :  { %v4595_v58 = vmul.f32 1.442695, %v4582_v6 }
 0xa47   :  { %v4565_v37 = vpop.xlane.xlu1 %4564  ;;  %v4593_v10 = vmul.f32 1.442695, %v4581_v18 }
 0xa48   :  { %v4553_v19 = vpop.xlane.xlu0 %4552  ;;  %v4587_v28 = vsub.f32 %v4355_v25, %v4565_v37 }
 0xa49   :  { %v4583_v60 = vsub.f32 %v4173_v7, %v4553_v19 }
 0xa4a   :  { %v4605_v38 = vmul.f32 1.442695, %v4587_v28 }
 0xa4b   :  { %v4597_v41 = vmul.f32 1.442695, %v4583_v60 }
 0xa4c   :  { %v4559_v27 = vpop.xlane.xlu1 %4558  ;;  %v4556_v30 = vpop.xlane.xlu0 %4555 }
 0xa4d   :  { %6921 = vpow2.f32 %v4597_v41  ;;  %v4584_v29 = vsub.f32 %v4178_v17, %v4556_v30  ;;  %v4585_v46 = vsub.f32 %v4264_v57, %v4559_v27 }
 0xa4e   :  { %6923 = vpow2.f32 %v4593_v10 }
 0xa4f   :  { %v4599_v61 = vmul.f32 1.442695, %v4584_v29  ;;  %v4601_v4 = vmul.f32 1.442695, %v4585_v46 }
 0xa50   :  { %v4577_v39 = vpop.xlane.xlu1 %4576  ;;  %v4562_v14 = vpop.xlane.xlu0 %4561 }
 0xa51   :  { %6925 = vpow2.f32 %v4599_v61  ;;  %v4591_v7 = vsub.f32 %v4537_v34, %v4577_v39  ;;  %v4586_v25 = vsub.f32 %v8046_v2, %v4562_v14 }
 0xa52   :  { %6927 = vpow2.f32 %v4605_v38 }
 0xa53   :  { %6929 = vpow2.f32 %v4595_v58  ;;  %v4613_v17 = vmul.f32 1.442695, %v4591_v7  ;;  %v4603_v47 = vmul.f32 1.442695, %v4586_v25 }
 0xa54   :  { %v4571_v51 = vpop.xlane.xlu1 %4570  ;;  %v4568_v59 = vpop.xlane.xlu0 %4567  ;;  %6931 = vpow2.f32 %v4601_v4 }
 0xa55   :  { %v4588_v21 = vsub.f32 %v4360_v3, %v4568_v59  ;;  %v4589_v22 = vsub.f32 %v4446_v33, %v4571_v51 }
 0xa57   :  { %v8073_v26 = vpop.eup %6921  ;;  %v4607_v57 = vmul.f32 1.442695, %v4588_v21  ;;  %v4609_v3 = vmul.f32 1.442695, %v4589_v22 }
 0xa58   :  { %v6749_v52 = vpop.permute.xlu1 %6748  ;;  %v4574_v40 = vpop.xlane.xlu0 %4573  ;;  %v4623_v13 = vsel %vm801_vm3, %v8073_v26, 0.0 }
 0xa59   :  { %v8077_v45 = vpop.eup %6923  ;;  %v6751_v34 = vunpack.i.h.bf16 %v6749_v52  ;;  %v6750_v2 = vunpack.i.l.bf16 %v6749_v52  ;;  %4624 = vadd.xlane.f32.xlu1 %v4623_v13  ;;  %6933 = vpow2.f32 %v4607_v57  ;;  %v4590_v28 = vsub.f32 %v8053_v55, %v4574_v40 }
 0xa5a   :  { %6935 = vpow2.f32 %v4613_v17  ;;  %v4617_v60 = vsel %vm801_vm3, %v8077_v45, 0.0 }
 0xa5b   :  { %v6481_v18 = vpack.c.bf16 %v6751_v34, %v6750_v2  ;;  %v8079_v37 = vpop.eup %6925  ;;  %6937 = vpow2.f32 %v4603_v47 }
 0xa5c   :  { %v6759_v33 = vpop.permute.xlu1 %6758  ;;  %v4580_v19 = vpop.xlane.xlu0 %4579  ;;  %v4626_v6 = vsel %vm801_vm3, %v8079_v37, 0.0  ;;  %6939 = vpow2.f32 %v4609_v3 }
 0xa5d   :  { %v8083_v10 = vpop.eup %6927  ;;  %v6761_v41 = vunpack.i.h.bf16 %v6759_v33  ;;  %v6760_v27 = vunpack.i.l.bf16 %v6759_v33  ;;  %v4592_v30 = vsub.f32 %v8057_v11, %v4580_v19  ;;  %6482 = vmatprep.subr.bf16.mxu0 %v6481_v18  ;;  %4618 = vadd.xlane.f32.xlu1 %v4617_v60  ;;  %v4611_v11 = vmul.f32 1.442695, %v4590_v28 }
 0xa5e   :  { %6484 = vmatpush3.bf16.msra.mxu0 %v6481_v18  ;;  %v8089_v29 = vpop.eup %6929  ;;  %4627 = vadd.xlane.f32.xlu0 %v4626_v6  ;;  %v4635_v55 = vsel %vm801_vm3, %v8083_v10, 0.0 }
 0xa5f   :  { %v8091_v38 = vpack.c.bf16 %v6761_v41, %v6760_v27  ;;  %v4615_v46 = vmul.f32 1.442695, %v4592_v30  ;;  %v8095_v14 = vpop.eup %6931  ;;  %v4620_v51 = vsel %vm801_vm3, %v8089_v29, 0.0 }
 0xa60   :  { %v6764_v61 = vpop.permute.xlu1 %6763  ;;  %v6754_v39 = vpop.permute.xlu0 %6753  ;;  %v4629_v17 = vsel %vm801_vm3, %v8095_v14, 0.0 }
 0xa61   :  { %6941 = vpow2.f32 %v4615_v46  ;;  %v6756_v58 = vunpack.i.h.bf16 %v6754_v39  ;;  %6490 = vmatprep.subr.bf16.mxu0 %v8091_v38  ;;  %4636 = vadd.xlane.f32.xlu1 %v4635_v55  ;;  %v6766_v4 = vunpack.i.h.bf16 %v6764_v61  ;;  %v6765_v7 = vunpack.i.l.bf16 %v6764_v61 }
 0xa62   :  { %v6755_v25 = vunpack.i.l.bf16 %v6754_v39  ;;  %4621 = vadd.xlane.f32.xlu0 %v4620_v51  ;;  %6943 = vpow2.f32 %v4611_v11 }
 0xa63   :  { %v8100_v59 = vpop.eup %6933  ;;  %v8110_v52 = vpack.c.bf16 %v6766_v4, %v6765_v7 }
 0xa64   :  { %v6485_v21 = vpack.c.bf16 %v6756_v58, %v6755_v25  ;;  %v8104_v22 = vpop.eup %6935  ;;  %v4638_v57 = vsel %vm801_vm3, %v8100_v59, 0.0 }
 0xa65   :  { %4630 = vadd.xlane.f32.xlu1 %v4629_v17  ;;  %v8108_v47 = vpop.eup %6937  ;;  %v4647_v40 = vsel %vm801_vm3, %v8104_v22, 0.0 }
 0xa66   :  { %6486 = vmatprep.subr.bf16.mxu1 %v6485_v21  ;;  %4639 = vadd.xlane.f32.xlu0 %v4638_v57  ;;  %v8115_v13 = vpop.eup %6939  ;;  %v4632_v34 = vsel %vm801_vm3, %v8108_v47, 0.0 }
 0xa67   :  { %6488 = vmatpush3.bf16.msra.mxu1 %v6485_v21  ;;  %v4641_v3 = vsel %vm801_vm3, %v8115_v13, 0.0 }
 0xa68   :  { %6494 = vmatprep.subr.bf16.mxu1 %v8110_v52 }
 0xa69   :  { %4648 = vadd.xlane.f32.xlu1 %v4647_v40 }
 0xa6a   :  { %4633 = vadd.xlane.f32.xlu0 %v4632_v34 }
 0xa6b   :  { %v8119_v2 = vpop.eup %6941 }
 0xa6c   :  { %v4650_v18 = vsel %vm801_vm3, %v8119_v2, 0.0  ;;  %v8125_v33 = vpop.eup %6943 }
 0xa6d   :  { %4642 = vadd.xlane.f32.xlu1 %v4641_v3  ;;  %v4644_v19 = vsel %vm801_vm3, %v8125_v33, 0.0 }
 0xa6e   :  { %4651 = vadd.xlane.f32.xlu0 %v4650_v18 }
 0xa72   :  { %4645 = vadd.xlane.f32.xlu0 %v4644_v19 }
 0xa7e   :  { %6773 = vrot.lane.b32.xlu1 %v7286_v48, %s7103_s8 }
 0xa82   :  { %2685 = vrot.lane.b32.xlu1 %v7766_v12, %s7090_s10 }
 0xa86   :  { %3949 = vrot.lane.b32.xlu1 %v8019_v50, %s7104_s11 }
 0xa88   :  { %6768 = vrot.lane.b32.xlu0 %v7277_v44, %s7103_s8 }
 0xa8a   :  { %2689 = vrot.lane.b32.xlu1 %v7762_v20, %s7090_s10 }
 0xa8c   :  { %2683 = vrot.lane.b32.xlu0 %v7768_v0, %s7090_s10 }
 0xa8e   :  { %3953 = vrot.lane.b32.xlu1 %v8015_v43, %s7104_s11 }
 0xa90   :  { %3947 = vrot.lane.b32.xlu0 %v8021_v62, %s7104_s11 }
 0xa92   :  { %2693 = vrot.lane.b32.xlu1 %v7774_v56, %s7090_s10 }
 0xa94   :  { %2687 = vrot.lane.b32.xlu0 %v7764_v5, %s7090_s10 }
 0xa96   :  { %3957 = vrot.lane.b32.xlu1 %v8027_v32, %s7104_s11 }
 0xa98   :  { %3951 = vrot.lane.b32.xlu0 %v8017_v36, %s7104_s11 }
 0xa9a   :  { %2697 = vrot.lane.b32.xlu1 %v7770_v49, %s7090_s10 }
 0xa9c   :  { %2691 = vrot.lane.b32.xlu0 %v7776_v63, %s7090_s10 }
 0xa9e   :  { %3961 = vrot.lane.b32.xlu1 %v8023_v35, %s7104_s11 }
 0xaa0   :  { %3955 = vrot.lane.b32.xlu0 %v8029_v53, %s7104_s11 }
 0xaa2   :  { %2701 = vrot.lane.b32.xlu1 %v7790_v54, %s7090_s10 }
 0xaa4   :  { %2695 = vrot.lane.b32.xlu0 %v7772_v16, %s7090_s10 }
 0xaa6   :  { %3965 = vrot.lane.b32.xlu1 %v8035_v1, %s7104_s11 }
 0xaa8   :  { %3959 = vrot.lane.b32.xlu0 %v8025_v42, %s7104_s11 }
 0xaaa   :  { %2705 = vrot.lane.b32.xlu1 %v7778_v9, %s7090_s10 }
 0xaac   :  { %2699 = vrot.lane.b32.xlu0 %v7792_v15, %s7090_s10 }
 0xab0   :  { %3963 = vrot.lane.b32.xlu0 %v8037_v31, %s7104_s11 }
 0xab4   :  { %2703 = vrot.lane.b32.xlu0 %v7780_v24, %s7090_s10 }
 0xae6   :  { %v4625_v44 = vpop.xlane.xlu1 %4624 }
 0xae7   :  { %6945 = vrcp.f32 %v4625_v44 }
 0xaea   :  { %v4619_v48 = vpop.xlane.xlu1 %4618 }
 0xaeb   :  { %6947 = vrcp.f32 %v4619_v48  ;;  %v4628_v20 = vpop.xlane.xlu0 %4627 }
 0xaec   :  { %6949 = vrcp.f32 %v4628_v20 }
 0xaee   :  { %v4637_v5 = vpop.xlane.xlu1 %4636 }
 0xaef   :  { %6951 = vrcp.f32 %v4637_v5  ;;  %v4622_v12 = vpop.xlane.xlu0 %4621 }
 0xaf0   :  { %6953 = vrcp.f32 %v4622_v12  ;;  %v5272_v12 = vld [vmem:[#allocation9] sm:$0xff] }
 0xaf1   :  { %v6946_v0 = vpop.eup %6945 }
 0xaf2   :  { %v4631_v49 = vpop.xlane.xlu1 %4630  ;;  %v4667_v16 = vmul.f32 %v6946_v0, %v8073_v26  ;;  %v5273_v0 = vld [vmem:[#allocation9 + $0x8] sm:$0xff] }
 0xaf3   :  { %6955 = vrcp.f32 %v4631_v49  ;;  %v4640_v56 = vpop.xlane.xlu0 %4639  ;;  %v6505_v49 = vpack.c.bf16 %v5273_v0, %v5272_v12 }
 0xaf4   :  { %6200 = vmatprep.mubr.msk.f32.mxu1 %vm801_vm3, %v4667_v16  ;;  %6957 = vrcp.f32 %v4640_v56  ;;  %v5274_v16 = vld [vmem:[#allocation9 + $0x10] sm:$0xff]  ;;  %v5275_v56 = vld [vmem:[#allocation9 + $0x18] sm:$0xff] }
 0xaf5   :  { %v6948_v63 = vpop.eup %6947 }
 0xaf6   :  { %v4649_v9 = vpop.xlane.xlu1 %4648  ;;  %v4665_v24 = vmul.f32 %v6948_v63, %v8077_v45  ;;  %v6950_v54 = vpop.eup %6949  ;;  %v6509_v63 = vpack.c.bf16 %v5275_v56, %v5274_v16 }
 0xaf7   :  { %6959 = vrcp.f32 %v4649_v9  ;;  %v4668_v15 = vmul.f32 %v6950_v54, %v8079_v37  ;;  %v4634_v43 = vpop.xlane.xlu0 %4633 }
 0xaf8   :  { %6193 = vmatprep.mubr.msk.f32.mxu0 %vm801_vm3, %v4665_v24  ;;  %6961 = vrcp.f32 %v4634_v43 }
 0xaf9   :  { %v6952_v36 = vpop.eup %6951  ;;  %6201 = vmatmul.mubr.msk.f32.vlgmr.msra.gmra.mrb[54].mxu1 %vm801_vm3, %v4668_v15 }
 0xafa   :  { %v4643_v50 = vpop.xlane.xlu1 %4642  ;;  %v4671_v62 = vmul.f32 %v6952_v36, %v8083_v10  ;;  %v6954_v35 = vpop.eup %6953  ;;  %6496 = vmatpush3.bf16.msra.mxu1 %v8110_v52 }
 0xafb   :  { %6963 = vrcp.f32 %v4643_v50  ;;  %v4666_v42 = vmul.f32 %v6954_v35, %v8089_v29  ;;  %v4652_v32 = vpop.xlane.xlu0 %4651 }
 0xafc   :  { %6214 = vmatprep.mubr.msk.f32.mxu1 %vm801_vm3, %v4671_v62  ;;  %6965 = vrcp.f32 %v4652_v32 }
 0xafd   :  { %v6956_v53 = vpop.eup %6955  ;;  %6194 = vmatmul.mubr.msk.f32.vlgmr.msra.gmra.mrb[42].mxu0 %vm801_vm3, %v4666_v42 }
 0xafe   :  { %v6774_v1 = vpop.permute.xlu1 %6773  ;;  %v4669_v31 = vmul.f32 %v6956_v53, %v8095_v14  ;;  %v6958_v26 = vpop.eup %6957  ;;  %6492 = vmatpush3.bf16.msra.mxu0 %v8091_v38 }
 0xaff   :  { %v6776_v45 = vunpack.i.h.bf16 %v6774_v1  ;;  %v6775_v37 = vunpack.i.l.bf16 %v6774_v1  ;;  %v4672_v60 = vmul.f32 %v6958_v26, %v8100_v59  ;;  %v4646_v10 = vpop.xlane.xlu0 %4645 }
 0xb00   :  { %6207 = vmatprep.mubr.msk.f32.mxu0 %vm801_vm3, %v4669_v31  ;;  %6967 = vrcp.f32 %v4646_v10 }
 0xb01   :  { %v6960_v28 = vpop.eup %6959  ;;  %v6501_v41 = vpack.c.bf16 %v6776_v45, %v6775_v37  ;;  %6215 = vmatmul.mubr.msk.f32.vlgmr.msra.gmra.mrb[56].mxu1 %vm801_vm3, %v4672_v60 }
 0xb02   :  { %v2686_v27 = vpop.permute.xlu1 %2685  ;;  %v4675_v30 = vmul.f32 %v6960_v28, %v8104_v22  ;;  %v6962_v6 = vpop.eup %6961 }
 0xb03   :  { %2721 = vst.msk [vmem:[#allocation2 + $0x8] sm:$0xff] %vm2719_vm4, %v2686_v27  ;;  %6502 = vmatprep.subr.bf16.mxu1 %v6501_v41  ;;  %v4670_v29 = vmul.f32 %v6962_v6, %v8108_v47  ;;  %v6769_v38 = vpop.permute.xlu0 %6768 }
 0xb04   :  { %6504 = vmatpush3.bf16.msra.mxu1 %v6501_v41  ;;  %6228 = vmatprep.mubr.msk.f32.mxu1 %vm801_vm3, %v4675_v30  ;;  %v6771_v61 = vunpack.i.h.bf16 %v6769_v38  ;;  %v6770_v39 = vunpack.i.l.bf16 %v6769_v38 }
 0xb05   :  { %v6964_v46 = vpop.eup %6963  ;;  %6208 = vmatmul.mubr.msk.f32.vlgmr.msra.gmra.mrb[44].mxu0 %vm801_vm3, %v4670_v29 }
 0xb06   :  { %v3950_v55 = vpop.permute.xlu1 %3949  ;;  %v4673_v14 = vmul.f32 %v6964_v46, %v8115_v13  ;;  %v6966_v11 = vpop.eup %6965  ;;  %v6497_v58 = vpack.c.bf16 %v6771_v61, %v6770_v39 }
 0xb07   :  { %3985 = vst.msk [vmem:[#allocation2 + $0x8] sm:$0xff] %vm3983_vm5, %v3950_v55  ;;  %v4676_v4 = vmul.f32 %v6966_v11, %v8119_v2  ;;  %v2684_v7 = vpop.permute.xlu0 %2683 }
 0xb08   :  { %6221 = vmatprep.mubr.msk.f32.mxu0 %vm801_vm3, %v4673_v14  ;;  %2720 = vst.msk [vmem:[#allocation2] sm:$0xff] %vm2719_vm4, %v2684_v7  ;;  %6498 = vmatprep.subr.bf16.mxu0 %v6497_v58 }
 0xb09   :  { %6500 = vmatpush3.bf16.msra.mxu0 %v6497_v58  ;;  %6229 = vmatmul.mubr.msk.f32.vlgmr.msra.gmra.mrb[58].mxu1 %vm801_vm3, %v4676_v4 }
 0xb0a   :  { %v2690_v25 = vpop.permute.xlu1 %2689  ;;  %v6968_v51 = vpop.eup %6967  ;;  %6506 = vmatprep.subr.bf16.mxu0 %v6505_v49 }
 0xb0b   :  { %2723 = vst.msk [vmem:[#allocation2 + $0x18] sm:$0xff] %vm2719_vm4, %v2690_v25  ;;  %v4674_v59 = vmul.f32 %v6968_v51, %v8125_v33  ;;  %v3948_v21 = vpop.permute.xlu0 %3947  ;;  %v5632_v51 = vld [vmem:[%s8290_s5] ss:$0 sm:$0xff]  ;;  %s7106_s5 = smov [#allocation11]  }
 0xb0c   :  { %3984 = vst.msk [vmem:[#allocation2] sm:$0xff] %vm3983_vm5, %v3948_v21  ;;  %s5461_s13 = sshll.u32 %s7106_s5, 4  ;;  %s5462_s13 = int_to_ptr.vmem [resolvable:$true] %s5461_s13 }
 0xb0d   :  { %6222 = vmatmul.mubr.msk.f32.vlgmr.msra.gmra.mrb[46].mxu0 %vm801_vm3, %v4674_v59  ;;  %s7057_s14 = scalar_lea.vmem %s5462_s13, 1536  ;;  %p7062_p5 = scmp.lt.s32.totalorder %s5462_s13, %s5462_s13 }
 0xb0e   :  { %v3954_v17 = vpop.permute.xlu1 %3953  ;;  %6508 = vmatpush3.bf16.msra.mxu0 %v6505_v49  ;;  %p7058_p4 = scmp.ne.s32.totalorder %s5462_s13, %s7057_s14  ;;  %p7063_p6 = scmp.lt.s32.totalorder %s7057_s14, %s7057_s14 }
 0xb0f   :  { %3987 = vst.msk [vmem:[#allocation2 + $0x18] sm:$0xff] %vm3983_vm5, %v3954_v17  ;;  %v2688_v22 = vpop.permute.xlu0 %2687  ;;  %6510 = vmatprep.subr.bf16.mxu0 %v6509_v63 }
 0xb10   :  { %2722 = vst.msk [vmem:[#allocation2 + $0x10] sm:$0xff] %vm2719_vm4, %v2688_v22  ;;  %p7064_p7 = por %p7063_p6, %p7062_p5 }
 0xb12   :  { %v2694_v57 = vpop.permute.xlu1 %2693  ;;  %6512 = vmatpush3.bf16.msra.mxu0 %v6509_v63  ;;  %p7065_p8 = pnand %p7064_p7, %p7058_p4 }
 0xb13   :  { %2725 = vst.msk [vmem:[#allocation2 + $0x28] sm:$0xff] %vm2719_vm4, %v2694_v57  ;;  %v3952_v47 = vpop.permute.xlu0 %3951 }
 0xb14   :  { %3986 = vst.msk [vmem:[#allocation2 + $0x10] sm:$0xff] %vm3983_vm5, %v3952_v47 }
 0xb16   :  { %v3958_v52 = vpop.permute.xlu1 %3957 }
 0xb17   :  { %3989 = vst.msk [vmem:[#allocation2 + $0x28] sm:$0xff] %vm3983_vm5, %v3958_v52  ;;  %v2692_v40 = vpop.permute.xlu0 %2691 }
 0xb18   :  { %2724 = vst.msk [vmem:[#allocation2 + $0x20] sm:$0xff] %vm2719_vm4, %v2692_v40 }
 0xb1a   :  { %v2698_v13 = vpop.permute.xlu1 %2697 }
 0xb1b   :  { %2727 = vst.msk [vmem:[#allocation2 + $0x38] sm:$0xff] %vm2719_vm4, %v2698_v13  ;;  %v3956_v34 = vpop.permute.xlu0 %3955 }
 0xb1c   :  { %3988 = vst.msk [vmem:[#allocation2 + $0x20] sm:$0xff] %vm3983_vm5, %v3956_v34 }
 0xb1e   :  { %v3962_v2 = vpop.permute.xlu1 %3961 }
 0xb1f   :  { %3991 = vst.msk [vmem:[#allocation2 + $0x38] sm:$0xff] %vm3983_vm5, %v3962_v2  ;;  %v2696_v3 = vpop.permute.xlu0 %2695 }
 0xb20   :  { %2726 = vst.msk [vmem:[#allocation2 + $0x30] sm:$0xff] %vm2719_vm4, %v2696_v3 }
 0xb22   :  { %v2702_v18 = vpop.permute.xlu1 %2701 }
 0xb23   :  { %2729 = vst.msk [vmem:[#allocation2 + $0x48] sm:$0xff] %vm2719_vm4, %v2702_v18  ;;  %v3960_v33 = vpop.permute.xlu0 %3959 }
 0xb24   :  { %3990 = vst.msk [vmem:[#allocation2 + $0x30] sm:$0xff] %vm3983_vm5, %v3960_v33 }
 0xb26   :  { %v3966_v19 = vpop.permute.xlu1 %3965 }
 0xb27   :  { %3993 = vst.msk [vmem:[#allocation2 + $0x48] sm:$0xff] %vm3983_vm5, %v3966_v19  ;;  %v2700_v44 = vpop.permute.xlu0 %2699 }
 0xb28   :  { %2728 = vst.msk [vmem:[#allocation2 + $0x40] sm:$0xff] %vm2719_vm4, %v2700_v44 }
 0xb2a   :  { %v2706_v48 = vpop.permute.xlu1 %2705 }
 0xb2b   :  { %2731 = vst.msk [vmem:[#allocation2 + $0x58] sm:$0xff] %vm2719_vm4, %v2706_v48  ;;  %v3964_v20 = vpop.permute.xlu0 %3963 }
 0xb2c   :  { %3992 = vst.msk [vmem:[#allocation2 + $0x40] sm:$0xff] %vm3983_vm5, %v3964_v20 }
 0xb2f   :  { %v2704_v5 = vpop.permute.xlu0 %2703 }
 0xb30   :  { %2730 = vst.msk [vmem:[#allocation2 + $0x50] sm:$0xff] %vm2719_vm4, %v2704_v5 }
 0xbcc   :  { %v6202_v9 = vpop.f32.mrb[54].mxu1 }
 0xbcd   :  { %5217 = vrot.lane.b32.xlu1 %v6202_v9, %s7105_s0  ;;  %v4842_v24 = vpop.f32.mrb[55].mxu1 }
 0xbce   :  { %5215 = vrot.lane.b32.xlu0 %v4842_v24, %s7105_s0 }
 0xbd0   :  { %v6195_v54 = vpop.f32.mrb[42].mxu0 }
 0xbd1   :  { %v4755_v15 = vpop.f32.mrb[43].mxu0  ;;  %5213 = vrot.lane.b32.xlu1 %v6195_v54, %s7105_s0 }
 0xbd2   :  { %5211 = vrot.lane.b32.xlu0 %v4755_v15, %s7105_s0 }
 0xbd4   :  { %v6216_v43 = vpop.f32.mrb[56].mxu1 }
 0xbd5   :  { %5225 = vrot.lane.b32.xlu1 %v6216_v43, %s7105_s0  ;;  %v5016_v36 = vpop.f32.mrb[57].mxu1 }
 0xbd6   :  { %5223 = vrot.lane.b32.xlu0 %v5016_v36, %s7105_s0 }
 0xbd8   :  { %v6209_v50 = vpop.f32.mrb[44].mxu0 }
 0xbd9   :  { %v4929_v62 = vpop.f32.mrb[45].mxu0  ;;  %5221 = vrot.lane.b32.xlu1 %v6209_v50, %s7105_s0 }
 0xbda   :  { %5219 = vrot.lane.b32.xlu0 %v4929_v62, %s7105_s0 }
 0xbdc   :  { %v6230_v35 = vpop.f32.mrb[58].mxu1 }
 0xbdd   :  { %3969 = vrot.lane.b32.xlu1 %v8031_v8, %s7104_s11  ;;  %v5190_v42 = vpop.f32.mrb[59].mxu1 }
 0xbde   :  { %3967 = vrot.lane.b32.xlu0 %v8033_v23, %s7104_s11 }
 0xbe0   :  { %v6223_v32 = vpop.f32.mrb[46].mxu0 }
 0xbe1   :  { %v5103_v53 = vpop.f32.mrb[47].mxu0  ;;  %5229 = vrot.lane.b32.xlu1 %v6223_v32, %s7105_s0 }
 0xbe2   :  { %5227 = vrot.lane.b32.xlu0 %v5103_v53, %s7105_s0 }
 0xbe5   :  { %5233 = vrot.lane.b32.xlu1 %v6230_v35, %s7105_s0 }
 0xbe6   :  { %5231 = vrot.lane.b32.xlu0 %v5190_v42, %s7105_s0 }
 0xc3f   :  { %v5218_v1 = vpop.permute.xlu1 %5217 }
 0xc40   :  { %5251 = vst.msk [vmem:[#allocation2 + $0x18] sm:$0xff] %vm5247_vm6, %v5218_v1  ;;  %v5216_v31 = vpop.permute.xlu0 %5215 }
 0xc41   :  { %5250 = vst.msk [vmem:[#allocation2 + $0x10] sm:$0xff] %vm5247_vm6, %v5216_v31 }
 0xc43   :  { %v5214_v26 = vpop.permute.xlu1 %5213 }
 0xc44   :  { %5249 = vst.msk [vmem:[#allocation2 + $0x8] sm:$0xff] %vm5247_vm6, %v5214_v26  ;;  %v5212_v8 = vpop.permute.xlu0 %5211 }
 0xc45   :  { %5248 = vst.msk [vmem:[#allocation2] sm:$0xff] %vm5247_vm6, %v5212_v8 }
 0xc47   :  { %v5226_v23 = vpop.permute.xlu1 %5225  ;;  %v5263_v6 = vld [vmem:[#allocation2 + $0x18] sm:$0xff] }
 0xc48   :  { %5255 = vst.msk [vmem:[#allocation2 + $0x38] sm:$0xff] %vm5247_vm6, %v5226_v23  ;;  %v5224_v45 = vpop.permute.xlu0 %5223  ;;  %v5262_v41 = vld [vmem:[#allocation2 + $0x10] sm:$0xff] }
 0xc49   :  { %5254 = vst.msk [vmem:[#allocation2 + $0x30] sm:$0xff] %vm5247_vm6, %v5224_v45 }
 0xc4b   :  { %v5222_v37 = vpop.permute.xlu1 %5221  ;;  %v5261_v28 = vld [vmem:[#allocation2 + $0x8] sm:$0xff] }
 0xc4c   :  { %5253 = vst.msk [vmem:[#allocation2 + $0x28] sm:$0xff] %vm5247_vm6, %v5222_v37  ;;  %v5220_v60 = vpop.permute.xlu0 %5219  ;;  %v5260_v10 = vld [vmem:[#allocation2] sm:$0xff] }
 0xc4d   :  { %5252 = vst.msk [vmem:[#allocation2 + $0x20] sm:$0xff] %vm5247_vm6, %v5220_v60  ;;  %6239 = vmatprep.mubr.msk.f32.mxu0 %vm102_vm0, %v5260_v10 }
 0xc4e   :  { %6240 = vmatmul.mubr.msk.f32.vlgmr.msra.gmra.mrb[48].mxu0 %vm102_vm0, %v5261_v28 }
 0xc4f   :  { %6242 = vmatprep.mubr.msk.f32.mxu0 %vm102_vm0, %v5262_v41  ;;  %v3970_v27 = vpop.permute.xlu1 %3969  ;;  %v5267_v11 = vld [vmem:[#allocation2 + $0x38] sm:$0xff] }
 0xc50   :  { %3995 = vst.msk [vmem:[#allocation2 + $0x58] sm:$0xff] %vm3983_vm5, %v3970_v27  ;;  %v3968_v30 = vpop.permute.xlu0 %3967  ;;  %v5266_v39 = vld [vmem:[#allocation2 + $0x30] sm:$0xff] }
 0xc51   :  { %3994 = vst.msk [vmem:[#allocation2 + $0x50] sm:$0xff] %vm3983_vm5, %v3968_v30 }
 0xc52   :  { %6243 = vmatmul.mubr.msk.f32.gmra.mrb[50].mxu0 %vm102_vm0, %v5263_v6 }
 0xc53   :  { %v5230_v29 = vpop.permute.xlu1 %5229  ;;  %v5265_v61 = vld [vmem:[#allocation2 + $0x28] sm:$0xff] }
 0xc54   :  { %5257 = vst.msk [vmem:[#allocation2 + $0x48] sm:$0xff] %vm5247_vm6, %v5230_v29  ;;  %v5228_v38 = vpop.permute.xlu0 %5227  ;;  %v5264_v46 = vld [vmem:[#allocation2 + $0x20] sm:$0xff] }
 0xc55   :  { %5256 = vst.msk [vmem:[#allocation2 + $0x40] sm:$0xff] %vm5247_vm6, %v5228_v38  ;;  %6245 = vmatprep.mubr.msk.f32.mxu0 %vm102_vm0, %v5264_v46 }
 0xc56   :  { %6246 = vmatmul.mubr.msk.f32.gmra.mrb[52].mxu0 %vm102_vm0, %v5265_v61 }
 0xc57   :  { %6248 = vmatprep.mubr.msk.f32.mxu0 %vm102_vm0, %v5266_v39  ;;  %v5234_v55 = vpop.permute.xlu1 %5233 }
 0xc58   :  { %5259 = vst.msk [vmem:[#allocation2 + $0x58] sm:$0xff] %vm5247_vm6, %v5234_v55  ;;  %v5232_v14 = vpop.permute.xlu0 %5231 }
 0xc59   :  { %5258 = vst.msk [vmem:[#allocation2 + $0x50] sm:$0xff] %vm5247_vm6, %v5232_v14 }
 0xc5a   :  { %6249 = vmatmul.mubr.msk.f32.gmra.mrb[54].mxu0 %vm102_vm0, %v5267_v11 }
 0xc5b   :  { %v5269_v4 = vld [vmem:[#allocation2 + $0x48] sm:$0xff] }
 0xc5c   :  { %v5268_v58 = vld [vmem:[#allocation2 + $0x40] sm:$0xff] }
 0xc5d   :  { %6251 = vmatprep.mubr.msk.f32.mxu0 %vm102_vm0, %v5268_v58 }
 0xc5e   :  { %6252 = vmatmul.mubr.msk.f32.gmra.mrb[56].mxu0 %vm102_vm0, %v5269_v4 }
 0xc5f   :  { %v5271_v25 = vld [vmem:[#allocation2 + $0x58] sm:$0xff] }
 0xc60   :  { %v5270_v7 = vld [vmem:[#allocation2 + $0x50] sm:$0xff] }
 0xc61   :  { %6254 = vmatprep.mubr.msk.f32.mxu0 %vm102_vm0, %v5270_v7 }
 0xc62   :  { %6255 = vmatmul.mubr.msk.f32.gmra.mrb[58].mxu0 %vm102_vm0, %v5271_v25 }
 0xd21   :  { %v6241_v59 = vpop.f32.mrb[48].mxu0 }
 0xd22   :  { %v5391_v21 = vadd.f32 %v6241_v59, %v5632_v51  ;;  %v5385_v17 = vpop.f32.mrb[49].mxu0 }
 0xd23   :  { %v5386_v22 = vadd.f32 %v5632_v51, %v5385_v17 }
 0xd24   :  { %5445 = vst.msk [vmem:[#allocation11 + $0x8] sm:$0xff] %vm102_vm0, %v5391_v21 }
 0xd25   :  { %5444 = vst.msk [vmem:[#allocation11] sm:$0xff] %vm102_vm0, %v5386_v22  ;;  %v6244_v57 = vpop.f32.mrb[50].mxu0 }
 0xd26   :  { %v5401_v47 = vadd.f32 %v6244_v57, %v5632_v51  ;;  %v5395_v52 = vpop.f32.mrb[51].mxu0 }
 0xd27   :  { %v5396_v40 = vadd.f32 %v5632_v51, %v5395_v52 }
 0xd28   :  { %5447 = vst.msk [vmem:[#allocation11 + $0x18] sm:$0xff] %vm102_vm0, %v5401_v47 }
 0xd29   :  { %5446 = vst.msk [vmem:[#allocation11 + $0x10] sm:$0xff] %vm102_vm0, %v5396_v40  ;;  %v6247_v13 = vpop.f32.mrb[52].mxu0 }
 0xd2a   :  { %v5411_v34 = vadd.f32 %v6247_v13, %v5632_v51  ;;  %v5405_v2 = vpop.f32.mrb[53].mxu0 }
 0xd2b   :  { %v5406_v3 = vadd.f32 %v5632_v51, %v5405_v2 }
 0xd2c   :  { %5449 = vst.msk [vmem:[#allocation11 + $0x28] sm:$0xff] %vm102_vm0, %v5411_v34 }
 0xd2d   :  { %5448 = vst.msk [vmem:[#allocation11 + $0x20] sm:$0xff] %vm102_vm0, %v5406_v3  ;;  %v6250_v18 = vpop.f32.mrb[54].mxu0 }
 0xd2e   :  { %v5421_v33 = vadd.f32 %v6250_v18, %v5632_v51  ;;  %v5415_v19 = vpop.f32.mrb[55].mxu0 }
 0xd2f   :  { %v5416_v44 = vadd.f32 %v5632_v51, %v5415_v19 }
 0xd30   :  { %5451 = vst.msk [vmem:[#allocation11 + $0x38] sm:$0xff] %vm102_vm0, %v5421_v33 }
 0xd31   :  { %5450 = vst.msk [vmem:[#allocation11 + $0x30] sm:$0xff] %vm102_vm0, %v5416_v44  ;;  %v6253_v48 = vpop.f32.mrb[56].mxu0 }
 0xd32   :  { %v5431_v20 = vadd.f32 %v6253_v48, %v5632_v51  ;;  %v5425_v5 = vpop.f32.mrb[57].mxu0 }
 0xd33   :  { %v5426_v12 = vadd.f32 %v5632_v51, %v5425_v5 }
 0xd34   :  { %5453 = vst.msk [vmem:[#allocation11 + $0x48] sm:$0xff] %vm102_vm0, %v5431_v20 }
 0xd35   :  { %5452 = vst.msk [vmem:[#allocation11 + $0x40] sm:$0xff] %vm102_vm0, %v5426_v12  ;;  %v6256_v0 = vpop.f32.mrb[58].mxu0 }
 0xd36   :  { %v5441_v49 = vadd.f32 %v6256_v0, %v5632_v51  ;;  %v5435_v16 = vpop.f32.mrb[59].mxu0 }
 0xd37   :  { %v5436_v56 = vadd.f32 %v5632_v51, %v5435_v16 }
 0xd38   :  { %5455 = vst.msk [vmem:[#allocation11 + $0x58] sm:$0xff] %vm102_vm0, %v5441_v49 }
 0xd39   :  { %5454 = vst.msk [vmem:[#allocation11 + $0x50] sm:$0xff] %vm102_vm0, %v5436_v56 }
 0xd3a   :  { %7068 = shalt.err (!%p7065_p8)
}
 0xd3b   :  { %s7069_s17 = scalar_lea.hbm %s8291_s6, 1536 }
 0xd3c   :  { %p7070_p9 = scmp.ne.s32.totalorder %s8291_s6, %s7069_s17  ;;  %p7073_p10 = scmp.lt.u32.totalorder %s7069_s17, %s8291_s6 }
 0xd3e   :  { %p7075_p11 = pnand %p7073_p10, %p7070_p9 }
 0xd40   :  { %7078 = shalt.err (!%p7075_p11)
}
 0xd41   :  { %5467 = dma.vmem_to_hbm [thread:$0]  %s5462_s13, 1536, %s8291_s6, [#allocation5], %s7089_s9, %s7089_s9, %s7090_s10  }
 0xd42   :  { %7085 = dma.done.wait [#allocation5], 1536  }
 0xd43   :  { %7086 = vsyncadd [#allocation5], 4294965760 }
 0xd44   :  { %5471 = vsyncpa [#allocation4], 1 }
 0xd45   :  { %5472 = vsyncpa [#allocation7], 1 }
 0xd46   :  { %5473 = vsyncpa [#allocation10], 1 }
 0xd47   :  { %5474 = vsyncpa [#allocation5], 1 }

</bundles_post_ra>
